<compile_context>
chip_gen: v5e
topology: v5e:2x2
jax: 0.10.0
libtpu: 0.0.40
codegen_flags: <defaults>
</compile_context>

<pallas_src>
import functools

import jax
import jax.numpy as jnp
import numpy as np
from jax.experimental import pallas as pl
from jax.experimental.pallas import tpu as pltpu

S, B, L = 2, 12, 14      # input (seq, batch, length) as implied by the driving tensor
E = L // 2               # d_model = cnn_out_channels = 7 (after MaxPool1d(2))
SB = S * B               # stacked (seq*batch) rows = 24
F = 2048                 # PyTorch default dim_feedforward
O = 2                    # classifier output dim
LN_EPS = 1e-5

# ---- packed-parameter slab layout (f32, lane width 4E = 28) ----------------
SLAB_LANES = 4 * E       # 28
ROW_WA = 0               # rows 0:7   -> fused [wq|wk|wv|wo]           (E, 4E)
ROW_BQ = 8               # row 8      -> bq                            (E,)
ROW_BKV = 9              # row 9      -> [bk|bv]                       (2E,)
ROW_BO = 10              # row 10     -> out-proj bias                 (E,)
ROW_G1 = 11              # row 11     -> ln1 gamma                     (E,)
ROW_BE1 = 12             # row 12     -> ln1 beta                      (E,)
ROW_B2 = 13              # row 13     -> lin2 bias                     (E,)
ROW_G2 = 14              # row 14     -> ln2 gamma                     (E,)
ROW_BE2 = 15             # row 15     -> ln2 beta                      (E,)
ROW_BC = 16              # row 16     -> classifier bias               (O,)
ROW_WC0 = 24             # rows 24:48 -> classifier weight, output 0   (SB, E)
ROW_WC1 = 48             # rows 48:72 -> classifier weight, output 1   (SB, E)
ROW_PERM = 72            # rows 72:96 -> seq-block swap permutation    (SB, SB)
ROW_SEL = 96             # rows 96:98 -> seq-block selection matrix    (S, SB)
SLAB_ROWS = 104          # padded to a multiple of 8 sublanes


def _kernel(x_ref, slab_ref, w1b_hbm, w2t_hbm, out_ref,
            w1b_vmem, w2t_vmem, sem, *, bf16_act):
    # Kick off the two big (bf16) FFN weight DMAs first; everything up to LN1
    # runs while they are in flight.
    cp1 = pltpu.make_async_copy(w1b_hbm, w1b_vmem, sem.at[0])
    cp2 = pltpu.make_async_copy(w2t_hbm, w2t_vmem, sem.at[1])
    cp1.start()
    cp2.start()

    scale = 1.0 / (float(E) ** 0.5)

    def layer_norm(v, g, b):
        mu = jnp.mean(v, axis=-1, keepdims=True)
        d = v - mu
        var = jnp.mean(d * d, axis=-1, keepdims=True)
        return d * jax.lax.rsqrt(var + LN_EPS) * g + b

    # ---- static slices of the packed parameter slab (free ref views) ------
    wa = slab_ref[ROW_WA:ROW_WA + E, :]                 # (E, 4E) = [wq|wk|wv|wo]
    bq = slab_ref[ROW_BQ:ROW_BQ + 1, 0:E]
    bkv = slab_ref[ROW_BKV:ROW_BKV + 1, 0:2 * E]
    bo = slab_ref[ROW_BO:ROW_BO + 1, 0:E]
    g1 = slab_ref[ROW_G1:ROW_G1 + 1, 0:E]
    be1 = slab_ref[ROW_BE1:ROW_BE1 + 1, 0:E]
    b2 = slab_ref[ROW_B2:ROW_B2 + 1, 0:E]
    g2 = slab_ref[ROW_G2:ROW_G2 + 1, 0:E]
    be2 = slab_ref[ROW_BE2:ROW_BE2 + 1, 0:E]
    bc = slab_ref[ROW_BC:ROW_BC + 1, 0:O]
    wc0 = slab_ref[ROW_WC0:ROW_WC0 + SB, 0:E]           # (SB, E)
    wc1 = slab_ref[ROW_WC1:ROW_WC1 + SB, 0:E]           # (SB, E)
    perm = slab_ref[ROW_PERM:ROW_PERM + SB, 0:SB]       # (SB, SB) constant
    sel = slab_ref[ROW_SEL:ROW_SEL + S, 0:SB]           # (S, SB) constant

    # ---- MaxPool1d(kernel=2, stride=2): max of the two window samples -----
    xs = jnp.maximum(x_ref[0], x_ref[1])                # (SB, E)

    # ---- fused Q/K/V projection: one (SB,E)@(E,3E) MXU matmul -------------
    qkv = jnp.dot(xs, wa[:, 0:3 * E], preferred_element_type=jnp.float32)
    q = qkv[:, 0:E] + bq                                # (SB, E)
    kv = qkv[:, E:3 * E] + bkv                          # (SB, 2E) = [k | v]

    # Single permutation matmul swaps the two seq blocks of K and V at once.
    kv_swap = jnp.dot(perm, kv, preferred_element_type=jnp.float32)
    k, v = kv[:, 0:E], kv[:, E:2 * E]
    k_sw, v_sw = kv_swap[:, 0:E], kv_swap[:, E:2 * E]

    # ---- single-head attention over S=2: elementwise 2-way softmax --------
    l_same = jnp.sum(q * k, axis=-1, keepdims=True) * scale
    l_cross = jnp.sum(q * k_sw, axis=-1, keepdims=True) * scale
    m = jnp.maximum(l_same, l_cross)
    p_same = jnp.exp(l_same - m)
    p_cross = jnp.exp(l_cross - m)
    inv = pl.reciprocal(p_same + p_cross, approx=False)
    ctx = (p_same * v + p_cross * v_sw) * inv           # (SB, E)

    attn_out = jnp.dot(ctx, wa[:, 3 * E:4 * E],
                       preferred_element_type=jnp.float32) + bo
    h = layer_norm(xs + attn_out, g1, be1)              # post-norm 1

    # ---- FFN (bf16 operands, f32 accumulate); bias folded via ones lane ---
    h_aug = jnp.concatenate([h, jnp.ones((SB, 1), jnp.float32)], axis=-1)
    cp1.wait()                                          # w1b landed in VMEM
    if bf16_act:
        # v6e / v7x: bf16 VALU -> ReLU directly in bf16, no f32->bf16 cast.
        ff = jnp.dot(h_aug.astype(jnp.bfloat16), w1b_vmem[...],
                     preferred_element_type=jnp.bfloat16)       # (SB, F) bf16
        ff = jnp.maximum(ff, 0.0)
    else:
        # v5e and older: no bf16 VPU -> keep ReLU in f32, cast once after.
        ff = jnp.dot(h_aug.astype(jnp.bfloat16), w1b_vmem[...],
                     preferred_element_type=jnp.float32)        # (SB, F) f32
        ff = jnp.maximum(ff, 0.0).astype(jnp.bfloat16)
    cp2.wait()                                          # w2t landed in VMEM
    # Down-proj with TRANSPOSED weight (E, F): contract on the last dim of both
    # operands (trans_b) -> no (2048, 7) lane-padded layout anywhere.
    ffo = jax.lax.dot_general(ff, w2t_vmem[...],
                              (((1,), (1,)), ((), ())),
                              preferred_element_type=jnp.float32) + b2
    y = layer_norm(h + ffo, g2, be2)                    # post-norm 2

    # ---- classifier: per-output lane reduce + constant selection matmul ---
    # out[s, o] = sum_{b,e} y[s*B+b, e] * Wc[o, b*E+e] + bc[o]
    r0 = jnp.sum(y * wc0, axis=-1, keepdims=True)       # (SB, 1)
    r1 = jnp.sum(y * wc1, axis=-1, keepdims=True)       # (SB, 1)
    r = jnp.concatenate([r0, r1], axis=-1)              # (SB, O)
    out_ref[...] = jnp.dot(sel, r, preferred_element_type=jnp.float32) + bc


def pack_params(params):
    """Fuse / pack weights once (reuse across calls — only x changes)."""
    wq = params["in_proj_w"][0:E].T
    wk = params["in_proj_w"][E:2 * E].T
    wv = params["in_proj_w"][2 * E:3 * E].T
    wo = params["out_proj_w"].T
    w_attn = jnp.concatenate([wq, wk, wv, wo], axis=1)          # (E, 4E)

    bq = params["in_proj_b"][0:E]
    bk = params["in_proj_b"][E:2 * E]
    bv = params["in_proj_b"][2 * E:3 * E]

    # Compile-time constant matrices: seq-block swap permutation + selector.
    perm = np.zeros((SB, SB), np.float32)
    perm[np.arange(SB), (np.arange(SB) + B) % SB] = 1.0
    sel = np.zeros((S, SB), np.float32)
    for s in range(S):
        sel[s, s * B:(s + 1) * B] = 1.0

    wc = params["fc_w"].reshape(O, B, E)
    wc0 = jnp.tile(wc[0], (S, 1))                               # (SB, E)
    wc1 = jnp.tile(wc[1], (S, 1))                               # (SB, E)

    slab = jnp.zeros((SLAB_ROWS, SLAB_LANES), jnp.float32)
    slab = slab.at[ROW_WA:ROW_WA + E, 0:4 * E].set(w_attn)
    slab = slab.at[ROW_BQ, 0:E].set(bq)
    slab = slab.at[ROW_BKV, 0:2 * E].set(jnp.concatenate([bk, bv]))
    slab = slab.at[ROW_BO, 0:E].set(params["out_proj_b"])
    slab = slab.at[ROW_G1, 0:E].set(params["ln1_g"])
    slab = slab.at[ROW_BE1, 0:E].set(params["ln1_b"])
    slab = slab.at[ROW_B2, 0:E].set(params["lin2_b"])
    slab = slab.at[ROW_G2, 0:E].set(params["ln2_g"])
    slab = slab.at[ROW_BE2, 0:E].set(params["ln2_b"])
    slab = slab.at[ROW_BC, 0:O].set(params["fc_b"])
    slab = slab.at[ROW_WC0:ROW_WC0 + SB, 0:E].set(wc0)
    slab = slab.at[ROW_WC1:ROW_WC1 + SB, 0:E].set(wc1)
    slab = slab.at[ROW_PERM:ROW_PERM + SB, 0:SB].set(jnp.asarray(perm))
    slab = slab.at[ROW_SEL:ROW_SEL + S, 0:SB].set(jnp.asarray(sel))

    # FFN up-proj with bias folded in as an extra row: (E+1, F) bf16.
    w1b = jnp.concatenate(
        [params["lin1_w"].T, params["lin1_b"].reshape(1, F)],
        axis=0).astype(jnp.bfloat16)
    # FFN down-proj kept TRANSPOSED (PyTorch layout): (E, F) bf16.
    w2t = params["lin2_w"].astype(jnp.bfloat16)
    return slab, w1b, w2t


def maxpool_transformer_forward(x, slab, w1b, w2t, *, bf16_act):
    # ---- plain-JAX glue: pooling-window split into a stacked (2, SB, E) ----
    x = x.astype(jnp.float32)
    x_even = x[:, :, 0::2].reshape(SB, E)       # left sample of each pool window
    x_odd = x[:, :, 1::2].reshape(SB, E)        # right sample of each pool window
    x_win = jnp.stack([x_even, x_odd], axis=0)  # (2, SB, E)

    flops = (2 * SB * E * (3 * E)          # fused QKV projection
             + 2 * SB * SB * (2 * E)       # single [k|v] permutation matmul
             + 2 * SB * E * E              # out projection
             + 2 * SB * (E + 1) * F        # FFN up-projection (+bias row)
             + 2 * SB * F * E              # FFN down-projection (trans_b)
             + 2 * S * SB * O)             # classifier selection matmul
    # Tile-padded transfer sizes (f32 lanes pad to 128, bf16 sublanes pad to 16).
    bytes_accessed = (2 * SB * 128 * 4          # x_win
                      + SLAB_ROWS * 128 * 4     # packed parameter slab
                      + 16 * F * 2              # w1b (8,2048) bf16 -> (16,2048)
                      + 16 * F * 2              # w2t (7,2048) bf16 -> (16,2048)
                      + 8 * 128 * 4)            # output tile
    cost = pl.CostEstimate(flops=flops, transcendentals=3 * SB,
                           bytes_accessed=bytes_accessed)

    vmem = pl.BlockSpec(memory_space=pltpu.MemorySpace.VMEM)
    anyspace = pl.BlockSpec(memory_space=pl.ANY)
    kernel = functools.partial(_kernel, bf16_act=bf16_act)
    return pl.pallas_call(
        kernel,
        out_shape=jax.ShapeDtypeStruct((S, O), jnp.float32),
        in_specs=[vmem, vmem, anyspace, anyspace],
        out_specs=vmem,
        scratch_shapes=[pltpu.VMEM((E + 1, F), jnp.bfloat16),   # w1b landing buf
                        pltpu.VMEM((E, F), jnp.bfloat16),        # w2t landing buf
                        pltpu.SemaphoreType.DMA((2,))],
        cost_estimate=cost,
    )(x_win, slab, w1b, w2t)


def reference_forward(x, p):
    """Pure-JAX reference mirroring the PyTorch forward (eval mode)."""
    pooled = jnp.max(x.reshape(S, B, E, 2), axis=-1)
    wq, wk, wv = jnp.split(p["in_proj_w"], 3, axis=0)
    bq, bk, bv = jnp.split(p["in_proj_b"], 3)
    q = pooled @ wq.T + bq
    k = pooled @ wk.T + bk
    v = pooled @ wv.T + bv
    logits = jnp.einsum("sbe,tbe->bst", q, k) / jnp.sqrt(jnp.float32(E))
    attn = jax.nn.softmax(logits, axis=-1)
    ctx = jnp.einsum("bst,tbe->sbe", attn, v)
    ao = ctx @ p["out_proj_w"].T + p["out_proj_b"]

    def ln(v_, g, b):
        mu = jnp.mean(v_, axis=-1, keepdims=True)
        var = jnp.mean((v_ - mu) ** 2, axis=-1, keepdims=True)
        return (v_ - mu) * jax.lax.rsqrt(var + LN_EPS) * g + b

    h = ln(pooled + ao, p["ln1_g"], p["ln1_b"])
    f = jax.nn.relu(h @ p["lin1_w"].T + p["lin1_b"]) @ p["lin2_w"].T + p["lin2_b"]
    y = ln(h + f, p["ln2_g"], p["ln2_b"])
    return y.reshape(S, -1) @ p["fc_w"].T + p["fc_b"]


if __name__ == "__main__":
    key = jax.random.PRNGKey(0)
    ks = jax.random.split(key, 16)
    params = {
        "in_proj_w": 0.10 * jax.random.normal(ks[0], (3 * E, E), jnp.float32),
        "in_proj_b": 0.10 * jax.random.normal(ks[1], (3 * E,), jnp.float32),
        "out_proj_w": 0.10 * jax.random.normal(ks[2], (E, E), jnp.float32),
        "out_proj_b": 0.10 * jax.random.normal(ks[3], (E,), jnp.float32),
        "lin1_w": 0.05 * jax.random.normal(ks[4], (F, E), jnp.float32),
        "lin1_b": 0.05 * jax.random.normal(ks[5], (F,), jnp.float32),
        "lin2_w": 0.05 * jax.random.normal(ks[6], (E, F), jnp.float32),
        "lin2_b": 0.05 * jax.random.normal(ks[7], (E,), jnp.float32),
        "ln1_g": 1.0 + 0.05 * jax.random.normal(ks[8], (E,), jnp.float32),
        "ln1_b": 0.05 * jax.random.normal(ks[9], (E,), jnp.float32),
        "ln2_g": 1.0 + 0.05 * jax.random.normal(ks[10], (E,), jnp.float32),
        "ln2_b": 0.05 * jax.random.normal(ks[11], (E,), jnp.float32),
        "fc_w": 0.10 * jax.random.normal(ks[12], (O, B * E), jnp.float32),
        "fc_b": 0.10 * jax.random.normal(ks[13], (O,), jnp.float32),
    }
    x = jax.random.uniform(ks[14], (S, B, L), jnp.float32)

    # bf16 ReLU only where the VPU supports bf16 (v6e / v7x); f32 on v5e/older.
    device_kind = jax.devices()[0].device_kind.lower()
    bf16_act = ("v6" in device_kind) or ("v7" in device_kind)

    slab, w1b, w2t = pack_params(params)   # fuse/pack once; reusable across calls
    out = maxpool_transformer_forward(x, slab, w1b, w2t, bf16_act=bf16_act)
    out = jax.block_until_ready(out)
    ref = reference_forward(x, params)
    assert out.shape == (S, O)
    assert bool(jnp.allclose(out, ref, atol=2e-2, rtol=2e-2))
    print("KERNEL_OK")
</pallas_src>

<mosaic_0001>
module attributes {stable_mosaic.version = 11 : i64} {
  func.func @_kernel(%arg0: memref<2x24x7xf32, #tpu.memory_space<vmem>>, %arg1: memref<104x28xf32, #tpu.memory_space<vmem>>, %arg2: memref<8x2048xbf16, #tpu.memory_space<any>>, %arg3: memref<7x2048xbf16, #tpu.memory_space<any>>, %arg4: memref<2x2xf32, #tpu.memory_space<vmem>>, %arg5: memref<8x2048xbf16, #tpu.memory_space<vmem>>, %arg6: memref<7x2048xbf16, #tpu.memory_space<vmem>>, %arg7: memref<2x!tpu.dma_semaphore, #tpu.memory_space<semaphore_mem>>) attributes {dimension_semantics = [], scalar_prefetch = 0 : i64, scratch_operands = 3 : i64, tpu.core_type = #tpu.core_type<tc>} {
    %c0_i32 = arith.constant 0 : i32
    %0 = tpu.memref_slice %arg7[%c0_i32] : memref<2x!tpu.dma_semaphore, #tpu.memory_space<semaphore_mem>> -> memref<1x!tpu.dma_semaphore, #tpu.memory_space<semaphore_mem>>
    %1 = tpu.memref_squeeze %0 : memref<1x!tpu.dma_semaphore, #tpu.memory_space<semaphore_mem>> -> memref<!tpu.dma_semaphore, #tpu.memory_space<semaphore_mem>>
    tpu.enqueue_dma source(%arg2 : memref<8x2048xbf16, #tpu.memory_space<any>>) target(%arg5 : memref<8x2048xbf16, #tpu.memory_space<vmem>>) target_semaphore(%1 : memref<!tpu.dma_semaphore, #tpu.memory_space<semaphore_mem>>)
    %c1_i32 = arith.constant 1 : i32
    %2 = tpu.memref_slice %arg7[%c1_i32] : memref<2x!tpu.dma_semaphore, #tpu.memory_space<semaphore_mem>> -> memref<1x!tpu.dma_semaphore, #tpu.memory_space<semaphore_mem>>
    %3 = tpu.memref_squeeze %2 : memref<1x!tpu.dma_semaphore, #tpu.memory_space<semaphore_mem>> -> memref<!tpu.dma_semaphore, #tpu.memory_space<semaphore_mem>>
    tpu.enqueue_dma source(%arg3 : memref<7x2048xbf16, #tpu.memory_space<any>>) target(%arg6 : memref<7x2048xbf16, #tpu.memory_space<vmem>>) target_semaphore(%3 : memref<!tpu.dma_semaphore, #tpu.memory_space<semaphore_mem>>)
    %c0 = arith.constant 0 : index
    %c0_0 = arith.constant 0 : index
    %4 = vector.load %arg1[%c0, %c0_0] : memref<104x28xf32, #tpu.memory_space<vmem>>, vector<7x28xf32>
    %c8 = arith.constant 8 : index
    %c0_1 = arith.constant 0 : index
    %5 = vector.load %arg1[%c8, %c0_1] : memref<104x28xf32, #tpu.memory_space<vmem>>, vector<1x7xf32>
    %c9 = arith.constant 9 : index
    %c0_2 = arith.constant 0 : index
    %6 = vector.load %arg1[%c9, %c0_2] : memref<104x28xf32, #tpu.memory_space<vmem>>, vector<1x14xf32>
    %c10 = arith.constant 10 : index
    %c0_3 = arith.constant 0 : index
    %7 = vector.load %arg1[%c10, %c0_3] : memref<104x28xf32, #tpu.memory_space<vmem>>, vector<1x7xf32>
    %c11 = arith.constant 11 : index
    %c0_4 = arith.constant 0 : index
    %8 = vector.load %arg1[%c11, %c0_4] : memref<104x28xf32, #tpu.memory_space<vmem>>, vector<1x7xf32>
    %c12 = arith.constant 12 : index
    %c0_5 = arith.constant 0 : index
    %9 = vector.load %arg1[%c12, %c0_5] : memref<104x28xf32, #tpu.memory_space<vmem>>, vector<1x7xf32>
    %c13 = arith.constant 13 : index
    %c0_6 = arith.constant 0 : index
    %10 = vector.load %arg1[%c13, %c0_6] : memref<104x28xf32, #tpu.memory_space<vmem>>, vector<1x7xf32>
    %c14 = arith.constant 14 : index
    %c0_7 = arith.constant 0 : index
    %11 = vector.load %arg1[%c14, %c0_7] : memref<104x28xf32, #tpu.memory_space<vmem>>, vector<1x7xf32>
    %c15 = arith.constant 15 : index
    %c0_8 = arith.constant 0 : index
    %12 = vector.load %arg1[%c15, %c0_8] : memref<104x28xf32, #tpu.memory_space<vmem>>, vector<1x7xf32>
    %c16 = arith.constant 16 : index
    %c0_9 = arith.constant 0 : index
    %13 = vector.load %arg1[%c16, %c0_9] : memref<104x28xf32, #tpu.memory_space<vmem>>, vector<1x2xf32>
    %c24 = arith.constant 24 : index
    %c0_10 = arith.constant 0 : index
    %14 = vector.load %arg1[%c24, %c0_10] : memref<104x28xf32, #tpu.memory_space<vmem>>, vector<24x7xf32>
    %c48 = arith.constant 48 : index
    %c0_11 = arith.constant 0 : index
    %15 = vector.load %arg1[%c48, %c0_11] : memref<104x28xf32, #tpu.memory_space<vmem>>, vector<24x7xf32>
    %c72 = arith.constant 72 : index
    %c0_12 = arith.constant 0 : index
    %16 = vector.load %arg1[%c72, %c0_12] : memref<104x28xf32, #tpu.memory_space<vmem>>, vector<24x24xf32>
    %c96 = arith.constant 96 : index
    %c0_13 = arith.constant 0 : index
    %17 = vector.load %arg1[%c96, %c0_13] : memref<104x28xf32, #tpu.memory_space<vmem>>, vector<2x24xf32>
    %c0_14 = arith.constant 0 : index
    %c0_15 = arith.constant 0 : index
    %c0_16 = arith.constant 0 : index
    %18 = vector.load %arg0[%c0_14, %c0_15, %c0_16] : memref<2x24x7xf32, #tpu.memory_space<vmem>>, vector<1x24x7xf32>
    %19 = vector.shape_cast %18 : vector<1x24x7xf32> to vector<24x7xf32>
    %c1 = arith.constant 1 : index
    %c0_17 = arith.constant 0 : index
    %c0_18 = arith.constant 0 : index
    %20 = vector.load %arg0[%c1, %c0_17, %c0_18] : memref<2x24x7xf32, #tpu.memory_space<vmem>>, vector<1x24x7xf32>
    %21 = vector.shape_cast %20 : vector<1x24x7xf32> to vector<24x7xf32>
    %22 = arith.maximumf %19, %21 : vector<24x7xf32>
    %23 = vector.extract_strided_slice %4 {offsets = [0, 0], sizes = [7, 21], strides = [1, 1]} : vector<7x28xf32> to vector<7x21xf32>
    %cst = arith.constant dense<0.000000e+00> : vector<24x21xf32>
    %24 = tpu.matmul %22, %23, %cst {dimension_numbers = #tpu.dot_dimension_numbers<[1], [0], [0], [1], [0, 0, 1, 1], [], []>} : vector<24x7xf32>, vector<7x21xf32>, vector<24x21xf32> -> vector<24x21xf32>
    %25 = vector.extract_strided_slice %24 {offsets = [0, 0], sizes = [24, 7], strides = [1, 1]} : vector<24x21xf32> to vector<24x7xf32>
    %26 = vector.broadcast %5 : vector<1x7xf32> to vector<24x7xf32>
    %27 = arith.addf %25, %26 : vector<24x7xf32>
    %28 = vector.extract_strided_slice %24 {offsets = [0, 7], sizes = [24, 14], strides = [1, 1]} : vector<24x21xf32> to vector<24x14xf32>
    %29 = vector.broadcast %6 : vector<1x14xf32> to vector<24x14xf32>
    %30 = arith.addf %28, %29 : vector<24x14xf32>
    %cst_19 = arith.constant dense<0.000000e+00> : vector<24x14xf32>
    %31 = tpu.matmul %16, %30, %cst_19 {dimension_numbers = #tpu.dot_dimension_numbers<[1], [0], [0], [1], [0, 0, 1, 1], [], []>} : vector<24x24xf32>, vector<24x14xf32>, vector<24x14xf32> -> vector<24x14xf32>
    %32 = vector.extract_strided_slice %30 {offsets = [0, 0], sizes = [24, 7], strides = [1, 1]} : vector<24x14xf32> to vector<24x7xf32>
    %33 = vector.extract_strided_slice %30 {offsets = [0, 7], sizes = [24, 7], strides = [1, 1]} : vector<24x14xf32> to vector<24x7xf32>
    %34 = vector.extract_strided_slice %31 {offsets = [0, 0], sizes = [24, 7], strides = [1, 1]} : vector<24x14xf32> to vector<24x7xf32>
    %35 = vector.extract_strided_slice %31 {offsets = [0, 7], sizes = [24, 7], strides = [1, 1]} : vector<24x14xf32> to vector<24x7xf32>
    %36 = arith.mulf %27, %32 : vector<24x7xf32>
    %cst_20 = arith.constant dense<0.000000e+00> : vector<24xf32>
    %37 = vector.multi_reduction <add>, %36, %cst_20 [1] : vector<24x7xf32> to vector<24xf32>
    %38 = vector.shape_cast %37 : vector<24xf32> to vector<24x1xf32>
    %cst_21 = arith.constant 0.377964467 : f32
    %39 = vector.broadcast %cst_21 : f32 to vector<24x1xf32>
    %40 = arith.mulf %38, %39 : vector<24x1xf32>
    %41 = arith.mulf %27, %34 : vector<24x7xf32>
    %cst_22 = arith.constant dense<0.000000e+00> : vector<24xf32>
    %42 = vector.multi_reduction <add>, %41, %cst_22 [1] : vector<24x7xf32> to vector<24xf32>
    %43 = vector.shape_cast %42 : vector<24xf32> to vector<24x1xf32>
    %cst_23 = arith.constant 0.377964467 : f32
    %44 = vector.broadcast %cst_23 : f32 to vector<24x1xf32>
    %45 = arith.mulf %43, %44 : vector<24x1xf32>
    %46 = arith.maximumf %40, %45 : vector<24x1xf32>
    %47 = arith.subf %40, %46 : vector<24x1xf32>
    %48 = math.exp %47 : vector<24x1xf32>
    %49 = arith.subf %45, %46 : vector<24x1xf32>
    %50 = math.exp %49 : vector<24x1xf32>
    %51 = arith.addf %48, %50 : vector<24x1xf32>
    %52 = tpu.reciprocal %51 : vector<24x1xf32> -> vector<24x1xf32>
    %53 = vector.broadcast %48 : vector<24x1xf32> to vector<24x7xf32>
    %54 = arith.mulf %53, %33 : vector<24x7xf32>
    %55 = vector.broadcast %50 : vector<24x1xf32> to vector<24x7xf32>
    %56 = arith.mulf %55, %35 : vector<24x7xf32>
    %57 = arith.addf %54, %56 : vector<24x7xf32>
    %58 = vector.broadcast %52 : vector<24x1xf32> to vector<24x7xf32>
    %59 = arith.mulf %57, %58 : vector<24x7xf32>
    %60 = vector.extract_strided_slice %4 {offsets = [0, 21], sizes = [7, 7], strides = [1, 1]} : vector<7x28xf32> to vector<7x7xf32>
    %cst_24 = arith.constant dense<0.000000e+00> : vector<24x7xf32>
    %61 = tpu.matmul %59, %60, %cst_24 {dimension_numbers = #tpu.dot_dimension_numbers<[1], [0], [0], [1], [0, 0, 1, 1], [], []>} : vector<24x7xf32>, vector<7x7xf32>, vector<24x7xf32> -> vector<24x7xf32>
    %62 = vector.broadcast %7 : vector<1x7xf32> to vector<24x7xf32>
    %63 = arith.addf %61, %62 : vector<24x7xf32>
    %64 = arith.addf %22, %63 : vector<24x7xf32>
    %cst_25 = arith.constant dense<0.000000e+00> : vector<24xf32>
    %65 = vector.multi_reduction <add>, %64, %cst_25 [1] : vector<24x7xf32> to vector<24xf32>
    %66 = vector.shape_cast %65 : vector<24xf32> to vector<24x1xf32>
    %cst_26 = arith.constant 7.000000e+00 : f32
    %67 = vector.broadcast %cst_26 : f32 to vector<24x1xf32>
    %68 = arith.divf %66, %67 : vector<24x1xf32>
    %69 = vector.broadcast %68 : vector<24x1xf32> to vector<24x7xf32>
    %70 = arith.subf %64, %69 : vector<24x7xf32>
    %71 = arith.mulf %70, %70 : vector<24x7xf32>
    %cst_27 = arith.constant dense<0.000000e+00> : vector<24xf32>
    %72 = vector.multi_reduction <add>, %71, %cst_27 [1] : vector<24x7xf32> to vector<24xf32>
    %73 = vector.shape_cast %72 : vector<24xf32> to vector<24x1xf32>
    %cst_28 = arith.constant 7.000000e+00 : f32
    %74 = vector.broadcast %cst_28 : f32 to vector<24x1xf32>
    %75 = arith.divf %73, %74 : vector<24x1xf32>
    %cst_29 = arith.constant 9.99999974E-6 : f32
    %76 = vector.broadcast %cst_29 : f32 to vector<24x1xf32>
    %77 = arith.addf %75, %76 : vector<24x1xf32>
    %78 = math.rsqrt %77 : vector<24x1xf32>
    %79 = vector.broadcast %78 : vector<24x1xf32> to vector<24x7xf32>
    %80 = arith.mulf %70, %79 : vector<24x7xf32>
    %81 = vector.broadcast %8 : vector<1x7xf32> to vector<24x7xf32>
    %82 = arith.mulf %80, %81 : vector<24x7xf32>
    %83 = vector.broadcast %9 : vector<1x7xf32> to vector<24x7xf32>
    %84 = arith.addf %82, %83 : vector<24x7xf32>
    %cst_30 = arith.constant 1.000000e+00 : f32
    %85 = vector.broadcast %cst_30 : f32 to vector<24x1xf32>
    %86 = tpu.concatenate %84, %85 in 1 : vector<24x7xf32>, vector<24x1xf32> -> vector<24x8xf32>
    %c0_i32_31 = arith.constant 0 : i32
    %87 = tpu.memref_slice %arg7[%c0_i32_31] : memref<2x!tpu.dma_semaphore, #tpu.memory_space<semaphore_mem>> -> memref<1x!tpu.dma_semaphore, #tpu.memory_space<semaphore_mem>>
    %88 = tpu.memref_squeeze %87 : memref<1x!tpu.dma_semaphore, #tpu.memory_space<semaphore_mem>> -> memref<!tpu.dma_semaphore, #tpu.memory_space<semaphore_mem>>
    tpu.wait_dma2 semaphore(%88 : memref<!tpu.dma_semaphore, #tpu.memory_space<semaphore_mem>>) src(%arg2 : memref<8x2048xbf16, #tpu.memory_space<any>>) dst(%arg5 : memref<8x2048xbf16, #tpu.memory_space<vmem>>)
    %89 = arith.truncf %86 : vector<24x8xf32> to vector<24x8xbf16>
    %c0_32 = arith.constant 0 : index
    %c0_33 = arith.constant 0 : index
    %90 = vector.load %arg5[%c0_32, %c0_33] : memref<8x2048xbf16, #tpu.memory_space<vmem>>, vector<8x2048xbf16>
    %cst_34 = arith.constant dense<0.000000e+00> : vector<24x2048xf32>
    %91 = tpu.matmul %89, %90, %cst_34 {dimension_numbers = #tpu.dot_dimension_numbers<[1], [0], [0], [1], [0, 0, 1, 1], [], []>} : vector<24x8xbf16>, vector<8x2048xbf16>, vector<24x2048xf32> -> vector<24x2048xf32>
    %cst_35 = arith.constant 0.000000e+00 : f32
    %92 = vector.broadcast %cst_35 : f32 to vector<24x2048xf32>
    %93 = arith.maximumf %91, %92 : vector<24x2048xf32>
    %94 = arith.truncf %93 : vector<24x2048xf32> to vector<24x2048xbf16>
    %c1_i32_36 = arith.constant 1 : i32
    %95 = tpu.memref_slice %arg7[%c1_i32_36] : memref<2x!tpu.dma_semaphore, #tpu.memory_space<semaphore_mem>> -> memref<1x!tpu.dma_semaphore, #tpu.memory_space<semaphore_mem>>
    %96 = tpu.memref_squeeze %95 : memref<1x!tpu.dma_semaphore, #tpu.memory_space<semaphore_mem>> -> memref<!tpu.dma_semaphore, #tpu.memory_space<semaphore_mem>>
    tpu.wait_dma2 semaphore(%96 : memref<!tpu.dma_semaphore, #tpu.memory_space<semaphore_mem>>) src(%arg3 : memref<7x2048xbf16, #tpu.memory_space<any>>) dst(%arg6 : memref<7x2048xbf16, #tpu.memory_space<vmem>>)
    %c0_37 = arith.constant 0 : index
    %c0_38 = arith.constant 0 : index
    %97 = vector.load %arg6[%c0_37, %c0_38] : memref<7x2048xbf16, #tpu.memory_space<vmem>>, vector<7x2048xbf16>
    %cst_39 = arith.constant dense<0.000000e+00> : vector<24x7xf32>
    %98 = tpu.matmul %94, %97, %cst_39 {dimension_numbers = #tpu.dot_dimension_numbers<[1], [1], [0], [0], [0, 0, 1, 0], [], []>} : vector<24x2048xbf16>, vector<7x2048xbf16>, vector<24x7xf32> -> vector<24x7xf32>
    %99 = vector.broadcast %10 : vector<1x7xf32> to vector<24x7xf32>
    %100 = arith.addf %98, %99 : vector<24x7xf32>
    %101 = arith.addf %84, %100 : vector<24x7xf32>
    %cst_40 = arith.constant dense<0.000000e+00> : vector<24xf32>
    %102 = vector.multi_reduction <add>, %101, %cst_40 [1] : vector<24x7xf32> to vector<24xf32>
    %103 = vector.shape_cast %102 : vector<24xf32> to vector<24x1xf32>
    %cst_41 = arith.constant 7.000000e+00 : f32
    %104 = vector.broadcast %cst_41 : f32 to vector<24x1xf32>
    %105 = arith.divf %103, %104 : vector<24x1xf32>
    %106 = vector.broadcast %105 : vector<24x1xf32> to vector<24x7xf32>
    %107 = arith.subf %101, %106 : vector<24x7xf32>
    %108 = arith.mulf %107, %107 : vector<24x7xf32>
    %cst_42 = arith.constant dense<0.000000e+00> : vector<24xf32>
    %109 = vector.multi_reduction <add>, %108, %cst_42 [1] : vector<24x7xf32> to vector<24xf32>
    %110 = vector.shape_cast %109 : vector<24xf32> to vector<24x1xf32>
    %cst_43 = arith.constant 7.000000e+00 : f32
    %111 = vector.broadcast %cst_43 : f32 to vector<24x1xf32>
    %112 = arith.divf %110, %111 : vector<24x1xf32>
    %cst_44 = arith.constant 9.99999974E-6 : f32
    %113 = vector.broadcast %cst_44 : f32 to vector<24x1xf32>
    %114 = arith.addf %112, %113 : vector<24x1xf32>
    %115 = math.rsqrt %114 : vector<24x1xf32>
    %116 = vector.broadcast %115 : vector<24x1xf32> to vector<24x7xf32>
    %117 = arith.mulf %107, %116 : vector<24x7xf32>
    %118 = vector.broadcast %11 : vector<1x7xf32> to vector<24x7xf32>
    %119 = arith.mulf %117, %118 : vector<24x7xf32>
    %120 = vector.broadcast %12 : vector<1x7xf32> to vector<24x7xf32>
    %121 = arith.addf %119, %120 : vector<24x7xf32>
    %122 = arith.mulf %121, %14 : vector<24x7xf32>
    %cst_45 = arith.constant dense<0.000000e+00> : vector<24xf32>
    %123 = vector.multi_reduction <add>, %122, %cst_45 [1] : vector<24x7xf32> to vector<24xf32>
    %124 = vector.shape_cast %123 : vector<24xf32> to vector<24x1xf32>
    %125 = arith.mulf %121, %15 : vector<24x7xf32>
    %cst_46 = arith.constant dense<0.000000e+00> : vector<24xf32>
    %126 = vector.multi_reduction <add>, %125, %cst_46 [1] : vector<24x7xf32> to vector<24xf32>
    %127 = vector.shape_cast %126 : vector<24xf32> to vector<24x1xf32>
    %128 = tpu.concatenate %124, %127 in 1 : vector<24x1xf32>, vector<24x1xf32> -> vector<24x2xf32>
    %cst_47 = arith.constant dense<0.000000e+00> : vector<2x2xf32>
    %129 = tpu.matmul %17, %128, %cst_47 {dimension_numbers = #tpu.dot_dimension_numbers<[1], [0], [0], [1], [0, 0, 1, 1], [], []>} : vector<2x24xf32>, vector<24x2xf32>, vector<2x2xf32> -> vector<2x2xf32>
    %130 = vector.broadcast %13 : vector<1x2xf32> to vector<2x2xf32>
    %131 = arith.addf %129, %130 : vector<2x2xf32>
    %c0_48 = arith.constant 0 : index
    %c0_49 = arith.constant 0 : index
    %132 = vector.load %arg4[%c0_48, %c0_49] : memref<2x2xf32, #tpu.memory_space<vmem>>, vector<2x2xf32>
    tpu.vector_store %arg4[%c0_48, %c0_49], %131 {strides = array<i32>} : memref<2x2xf32, #tpu.memory_space<vmem>>, vector<2x2xf32>,
    return
  }
}

</mosaic_0001>

<bundles_post_ra>
// kernel: tpu_custom_call.1
= control target key start
LH: loop header
LB: loop body
LE: loop exit
PB: predicated region body
PF: predicated region fallthrough
CT: control target
= control target key end

     0   :  { %9 = vsyncpa [#allocation6], 0  ;;  %s2111_s0 = inlined_call_operand.vmem [shape: f32[2,24,7], index: 0, kind: input, shape index: {}]   ;;  %s2112_s1 = inlined_call_operand.vmem [shape: f32[104,28], index: 1, kind: input, shape index: {}]   ;;  %s2113_s2 = inlined_call_operand.vmem [shape: bf16[8,2048], index: 2, kind: input, shape index: {}]   ;;  %s2114_s3 = inlined_call_operand.vmem [shape: bf16[7,2048], index: 3, kind: input, shape index: {}]   ;;  %s2115_s4 = inlined_call_operand.hbm [shape: f32[2,2], index: 4, kind: output, shape index: {}]  }
   0x1   :  { %v1621_v0 = vld [vmem:[%s2113_s2] sm:$0xff]  ;;  %v1626_v1 = vld [vmem:[%s2113_s2 + $0x8] sm:$0xff]  ;;  %v1631_v2 = vld [vmem:[%s2113_s2 + $0x10] sm:$0xff] }
   0x2   :  { %v1636_v3 = vld [vmem:[%s2113_s2 + $0x18] sm:$0xff]  ;;  %v1641_v4 = vld [vmem:[%s2113_s2 + $0x20] sm:$0xff]  ;;  %v1646_v5 = vld [vmem:[%s2113_s2 + $0x28] sm:$0xff] }
   0x3   :  { %v1651_v6 = vld [vmem:[%s2113_s2 + $0x30] sm:$0xff]  ;;  %v1656_v7 = vld [vmem:[%s2113_s2 + $0x38] sm:$0xff] }
   0x4   :  { %46 = vsyncadd [#allocation4], 1024  ;;  %v1661_v8 = vld [vmem:[%s2114_s3] sm:$0xff]  ;;  %v1666_v9 = vld [vmem:[%s2114_s3 + $0x8] sm:$0xff] }
   0x5   :  { %v1671_v10 = vld [vmem:[%s2114_s3 + $0x10] sm:$0xff]  ;;  %v1676_v11 = vld [vmem:[%s2114_s3 + $0x18] sm:$0xff]  ;;  %v1681_v12 = vld [vmem:[%s2114_s3 + $0x20] sm:$0xff] }
   0x6   :  { %v1686_v13 = vld [vmem:[%s2114_s3 + $0x28] sm:$0xff]  ;;  %v1691_v14 = vld [vmem:[%s2114_s3 + $0x30] sm:$0xff]  ;;  %v1696_v15 = vld [vmem:[%s2114_s3 + $0x38] sm:$0xff] }
   0x7   :  { %79 = vsyncadd [#allocation4 + $0x1], 1024  ;;  %v1701_v16 = vld [vmem:[%s2112_s1] sm:$0x7f]  ;;  %v1706_v17 = vld [vmem:[%s2112_s1 + $0xd] sm:$0x1] }
   0x8   :  { %v1711_v18 = vld [vmem:[%s2112_s1 + $0xe] sm:$0x1]  ;;  %v1716_v19 = vld [vmem:[%s2112_s1 + $0xf] sm:$0x1]  ;;  %v1721_v20 = vld [vmem:[%s2112_s1 + $0x10] sm:$0x1] }
   0x9   :  { %2116 = vst [vmem:[#allocation12_spill] sm:$0xff] %v1721_v20  ;;  %v1726_v21 = vld [vmem:[%s2112_s1 + $0x18] sm:$0xff]  ;;  %v1731_v22 = vld [vmem:[%s2112_s1 + $0x20] sm:$0xff]  ;;  %v1736_v23 = vld [vmem:[%s2112_s1 + $0x28] sm:$0xff]  ;;  %vm120_vm0 = vcmask 1046528   ;;  %vm110_vm1 = vcmask 56320  }
   0xa   :  { %2117 = vst [vmem:[#allocation13_spill] sm:$0xff] %v1726_v21  ;;  %v1741_v24 = vld [vmem:[%s2112_s1 + $0x30] sm:$0xff]  ;;  %v1746_v25 = vld [vmem:[%s2112_s1 + $0x38] sm:$0xff]  ;;  %v1751_v26 = vld [vmem:[%s2112_s1 + $0x40] sm:$0xff]  ;;  %1467 = vmatpush.msk.msra.mxu0 %vm120_vm0, %v1701_v16  ;;  %s1587_s26 = smov 7   ;;  %s1588_s30 = smov 121  }
   0xb   :  { %2118 = vst [vmem:[#allocation14_spill] sm:$0xff] %v1731_v22  ;;  %v1758_v27 = vld [vmem:[%s2112_s1 + $0x60] sm:$0x3]  ;;  %v1464_v29 = vld [vmem:[%s2111_s0 + $0x18] sm:$0xff]  ;;  %v1520_v31 = vld [vmem:[%s2112_s1 + $0x9] ss:$0 sm:$0xff] }
   0xc   :  { %2119 = vst [vmem:[#allocation15_spill] sm:$0xff] %v1741_v24  ;;  %v100_v28 = vld [vmem:[%s2111_s0] sm:$0xff]  ;;  %v101_v32 = vld [vmem:[%s2111_s0 + $0x8] sm:$0xff]  ;;  %156 = vrot.lane.b32.xlu0 %v1520_v31, %s1587_s26  ;;  %v102_v35 = vld [vmem:[%s2111_s0 + $0x10] sm:$0xff]  ;;  %vm174_vm2 = vcmask 195584   ;;  %s1589_s12 = smov 107  }
   0xd   :  { %2120 = vst [vmem:[#allocation16_spill] sm:$0xff] %v1746_v25  ;;  %v1766_v30 = vmax.f32 %v100_v28, %v1464_v29  ;;  %v1465_v33 = vld [vmem:[%s2111_s0 + $0x20] sm:$0xff]  ;;  %v1466_v36 = vld [vmem:[%s2111_s0 + $0x28] sm:$0xff]  ;;  %v97_v57 = vld [vmem:[%s2112_s1 + $0x50] sm:$0xff]  ;;  %s1590_s2 = smov 114  }
   0xe   :  { %2121 = vst [vmem:[#allocation17_spill] sm:$0xff] %v1758_v27  ;;  %v1780_v34 = vmax.f32 %v101_v32, %v1465_v33  ;;  %v1790_v37 = vmax.f32 %v102_v35, %v1466_v36  ;;  %v1521_v42 = vld [vmem:[%s2112_s1 + $0x8] ss:$0 sm:$0xff]  ;;  %v98_v58 = vld [vmem:[%s2112_s1 + $0x58] sm:$0xff] }
   0xf   :  { %1468 = vmatmul.msk.f32.vlgmr.msra.gmra.mxu0 %vm110_vm1, %v1766_v30  ;;  %v96_v56 = vld [vmem:[%s2112_s1 + $0x48] sm:$0xff] }
  0x17   :  { %1469 = vmatmul.msk.f32.gmra.mxu0 %vm110_vm1, %v1780_v34 }
  0x1f   :  { %1470 = vmatmul.msk.f32.gmra.mxu0 %vm110_vm1, %v1790_v37 }
  0x7e   :  { %v157_v39 = vpop.permute.xlu0 %156 }
  0x8c   :  { %v141_v38 = vpop.f32.mrf.mxu0 }
  0x8d   :  { %v1800_v44 = vadd.f32 %v157_v39, %v141_v38  ;;  %v151_v51 = vadd.f32 %v1521_v42, %v141_v38 }
  0x94   :  { %v144_v40 = vpop.f32.mrf.mxu0 }
  0x95   :  { %v1794_v41 = vadd.f32 %v157_v39, %v144_v40  ;;  %v152_v47 = vadd.f32 %v1521_v42, %v144_v40 }
  0x97   :  { %167 = vrot.lane.b32.xlu1 %v1794_v41, %s1588_s30 }
  0x9c   :  { %v147_v43 = vpop.f32.mrf.mxu0 }
  0x9d   :  { %v153_v45 = vadd.f32 %v1521_v42, %v147_v43  ;;  %v1802_v46 = vadd.f32 %v157_v39, %v147_v43 }
  0x9f   :  { %165 = vrot.lane.b32.xlu1 %v1800_v44, %s1588_s30  ;;  %169 = vrot.lane.b32.xlu0 %v1802_v46, %s1588_s30 }
 0x109   :  { %v168_v48 = vpop.permute.xlu1 %167 }
 0x10a   :  { %v211_v49 = vmul.f32 %v168_v48, %v152_v47 }
 0x10c   :  { %v216_v50 = vsel %vm110_vm1, %v211_v49, 0.0 }
 0x10d   :  { %217 = vadd.xlane.f32.xlu0 %v216_v50 }
 0x111   :  { %v166_v52 = vpop.permute.xlu1 %165  ;;  %v170_v53 = vpop.permute.xlu0 %169 }
 0x112   :  { %197 = vmatpush.msra.mxu1 %v170_v53  ;;  %v210_v54 = vmul.f32 %v166_v52, %v151_v51  ;;  %v212_v62 = vmul.f32 %v170_v53, %v153_v45 }
 0x114   :  { %198 = vmatpush.msra.mxu1 %v168_v48  ;;  %v213_v55 = vsel %vm110_vm1, %v210_v54, 0.0  ;;  %v219_v31 = vsel %vm110_vm1, %v212_v62, 0.0 }
 0x115   :  { %214 = vadd.xlane.f32.xlu2 %v213_v55 }
 0x116   :  { %199 = vmatpush.msra.mxu1 %v166_v52 }
 0x117   :  { %1471 = vmatmul.msk.f32.vlgmr.msra.gmra.mxu1 %vm174_vm2, %v96_v56 }
 0x11f   :  { %1472 = vmatmul.msk.f32.gmra.mxu1 %vm174_vm2, %v97_v57 }
 0x127   :  { %1473 = vmatmul.msk.f32.gmra.mxu1 %vm174_vm2, %v98_v58 }
 0x180   :  { %v218_v48 = vpop.xlane.xlu0 %217 }
 0x181   :  { %v223_v53 = vmul.f32 0.37796447, %v218_v48 }
 0x188   :  { %v215_v36 = vpop.xlane.xlu2 %214 }
 0x189   :  { %v222_v39 = vmul.f32 0.37796447, %v215_v36 }
 0x194   :  { %v201_v59 = vpop.f32.mrf.mxu1 }
 0x195   :  { %v225_v60 = vmul.f32 %v201_v59, %v151_v51 }
 0x197   :  { %v228_v61 = vsel %vm110_vm1, %v225_v60, 0.0 }
 0x198   :  { %229 = vadd.xlane.f32.xlu2 %v228_v61 }
 0x19c   :  { %v204_v63 = vpop.f32.mrf.mxu1 }
 0x19d   :  { %v226_v28 = vmul.f32 %v204_v63, %v152_v47 }
 0x19f   :  { %v231_v29 = vsel %vm110_vm1, %v226_v28, 0.0 }
 0x1a0   :  { %232 = vadd.xlane.f32.xlu1 %v231_v29  ;;  %220 = vadd.xlane.f32.xlu2 %v219_v31 }
 0x1a4   :  { %v207_v32 = vpop.f32.mrf.mxu1 }
 0x1a5   :  { %v227_v33 = vmul.f32 %v207_v32, %v153_v45 }
 0x1a7   :  { %v234_v35 = vsel %vm110_vm1, %v227_v33, 0.0 }
 0x1a8   :  { %235 = vadd.xlane.f32.xlu2 %v234_v35 }
 0x1b9   :  { %340 = vrot.lane.b32.xlu1 %v1701_v16, %s1589_s12 }
 0x20b   :  { %v230_v38 = vpop.xlane.xlu2 %229 }
 0x20c   :  { %v237_v40 = vmul.f32 0.37796447, %v230_v38 }
 0x20e   :  { %v240_v42 = vmax.f32 %v222_v39, %v237_v40 }
 0x210   :  { %v243_v43 = vsub.f32 %v222_v39, %v240_v42  ;;  %v252_v47 = vsub.f32 %v237_v40, %v240_v42 }
 0x212   :  { %v246_v49 = vmul.f32 1.442695, %v243_v43  ;;  %v255_v50 = vmul.f32 1.442695, %v252_v47 }
 0x213   :  { %v233_v51 = vpop.xlane.xlu1 %232  ;;  %v221_v52 = vpop.xlane.xlu2 %220 }
 0x214   :  { %1525 = vpow2.f32 %v246_v49  ;;  %v238_v45 = vmul.f32 0.37796447, %v233_v51  ;;  %v224_v61 = vmul.f32 0.37796447, %v221_v52 }
 0x215   :  { %1527 = vpow2.f32 %v255_v50 }
 0x216   :  { %v241_v54 = vmax.f32 %v223_v53, %v238_v45 }
 0x218   :  { %v244_v55 = vsub.f32 %v223_v53, %v241_v54  ;;  %v253_v56 = vsub.f32 %v238_v45, %v241_v54 }
 0x21a   :  { %v1526_v16 = vpop.eup %1525  ;;  %v248_v57 = vmul.f32 1.442695, %v244_v55  ;;  %v257_v58 = vmul.f32 1.442695, %v253_v56 }
 0x21b   :  { %v1528_v60 = vpop.eup %1527  ;;  %v236_v62 = vpop.xlane.xlu2 %235 }
 0x21c   :  { %v261_v28 = vadd.f32 %v1528_v60, %v1526_v16  ;;  %1529 = vpow2.f32 %v248_v57  ;;  %v239_v29 = vmul.f32 0.37796447, %v236_v62  ;;  %v309_v31 = vmul.f32 %v1528_v60, %v201_v59 }
 0x21d   :  { %1531 = vpow2.f32 %v257_v58 }
 0x21e   :  { %v242_v33 = vmax.f32 %v224_v61, %v239_v29  ;;  %315 = vrot.lane.b32.xlu2 %v309_v31, %s1587_s26  ;;  %v275_v57 = vand.u32 2147483648, %v261_v28  ;;  %vm269_vm4 = vweird.f32 %v261_v28  ;;  %v273_v58 = vand.u32 2147483647, %v261_v28 }
 0x220   :  { %v245_v35 = vsub.f32 %v224_v61, %v242_v33  ;;  %v254_v36 = vsub.f32 %v239_v29, %v242_v33  ;;  %v276_v62 = vor.u32 1.1754944e-38, %v275_v57  ;;  %vm274_vm6 = vcmp.eq.f32.partialorder %v273_v58, 8.507059e+37 }
 0x222   :  { %v1530_v38 = vpop.eup %1529  ;;  %v250_v39 = vmul.f32 1.442695, %v245_v35  ;;  %v259_v40 = vmul.f32 1.442695, %v254_v36 }
 0x223   :  { %v1532_v42 = vpop.eup %1531 }
 0x224   :  { %v262_v43 = vadd.f32 %v1532_v42, %v1530_v38  ;;  %1533 = vpow2.f32 %v250_v39  ;;  %v310_v47 = vmul.f32 %v1532_v42, %v204_v63  ;;  %v307_v42 = vmul.f32 %v1530_v38, %v1794_v41 }
 0x225   :  { %1535 = vpow2.f32 %v259_v40 }
 0x226   :  { %317 = vrot.lane.b32.xlu2 %v310_v47, %s1587_s26  ;;  %1537 = vrcp.f32 %v261_v28  ;;  %v289_v39 = vand.u32 2147483648, %v262_v43  ;;  %vm283_vm8 = vweird.f32 %v262_v43  ;;  %v287_v40 = vand.u32 2147483647, %v262_v43 }
 0x227   :  { %1539 = vrcp.f32 %v262_v43 }
 0x228   :  { %vm288_vm10 = vcmp.eq.f32.partialorder %v287_v40, 8.507059e+37 }
 0x22a   :  { %v1534_v48 = vpop.eup %1533 }
 0x22b   :  { %v1536_v49 = vpop.eup %1535 }
 0x22c   :  { %v263_v50 = vadd.f32 %v1536_v49, %v1534_v48  ;;  %v311_v59 = vmul.f32 %v1536_v49, %v207_v32  ;;  %v1538_v51 = vpop.eup %1537  ;;  %v306_v32 = vmul.f32 %v1526_v16, %v1800_v44  ;;  %v290_v44 = vor.u32 1.1754944e-38, %v289_v39 }
 0x22d   :  { %v265_v52 = vmul.f32 %v1538_v51, %v261_v28  ;;  %v1540_v45 = vpop.eup %1539  ;;  %vm270_vm3 = vweird.f32 %v1538_v51 }
 0x22e   :  { %319 = vrot.lane.b32.xlu0 %v311_v59, %s1587_s26  ;;  %v279_v55 = vmul.f32 %v1540_v45, %v262_v43  ;;  %vm271_vm5 = vmor %vm269_vm4, %vm270_vm3  ;;  %vm284_vm7 = vweird.f32 %v1540_v45  ;;  %1541 = vrcp.f32 %v263_v50  ;;  %vm297_vm12 = vweird.f32 %v263_v50 }
 0x22f   :  { %v266_v53 = vsub.f32 1.0, %v265_v52  ;;  %vm285_vm9 = vmor %vm283_vm8, %vm284_vm7  ;;  %v301_v41 = vand.u32 2147483647, %v263_v50 }
 0x230   :  { %v280_v63 = vsub.f32 1.0, %v279_v55 }
 0x231   :  { %v267_v54 = vmul.f32 %v1538_v51, %v266_v53  ;;  %vm302_vm14 = vcmp.eq.f32.partialorder %v301_v41, 8.507059e+37 }
 0x232   :  { %v281_v61 = vmul.f32 %v1540_v45, %v280_v63 }
 0x233   :  { %v268_v56 = vadd.f32 %v1538_v51, %v267_v54 }
 0x234   :  { %v282_v36 = vadd.f32 %v1540_v45, %v281_v61  ;;  %v1542_v52 = vpop.eup %1541 }
 0x235   :  { %v272_v60 = vsel %vm271_vm5, %v1538_v51, %v268_v56  ;;  %v341_v51 = vpop.permute.xlu1 %340  ;;  %v293_v53 = vmul.f32 %v1542_v52, %v263_v50  ;;  %vm298_vm11 = vweird.f32 %v1542_v52  ;;  %v308_v56 = vmul.f32 %v1534_v48, %v1802_v46  ;;  %v1522_v46 = vld [vmem:[%s2112_s1 + $0xa] ss:$0 sm:$0xff] }
 0x236   :  { %v277_v33 = vsel %vm274_vm6, %v276_v62, %v272_v60  ;;  %v286_v28 = vsel %vm285_vm9, %v1540_v45, %v282_v36  ;;  %1474 = vmatpush.msk.msra.mxu2 %vm120_vm0, %v341_v51  ;;  %v303_v45 = vand.u32 2147483648, %v263_v50  ;;  %vm299_vm13 = vmor %vm297_vm12, %vm298_vm11 }
 0x237   :  { %v291_v49 = vsel %vm288_vm10, %v290_v44, %v286_v28  ;;  %v294_v54 = vsub.f32 1.0, %v293_v53 }
 0x238   :  { %v304_v57 = vor.u32 1.1754944e-38, %v303_v45 }
 0x239   :  { %v295_v43 = vmul.f32 %v1542_v52, %v294_v54 }
 0x23b   :  { %v296_v55 = vadd.f32 %v1542_v52, %v295_v43 }
 0x23d   :  { %v300_v38 = vsel %vm299_vm13, %v1542_v52, %v296_v55 }
 0x23e   :  { %v305_v60 = vsel %vm302_vm14, %v304_v57, %v300_v38 }
 0x278   :  { %v316_v29 = vpop.permute.xlu2 %315 }
 0x279   :  { %v324_v31 = vadd.f32 %v316_v29, %v306_v32 }
 0x27b   :  { %v327_v35 = vmul.f32 %v324_v31, %v277_v33 }
 0x27d   :  { %334 = vrot.lane.b32.xlu2 %v327_v35, %s1590_s2 }
 0x280   :  { %v318_v16 = vpop.permute.xlu2 %317 }
 0x281   :  { %v325_v47 = vadd.f32 %v318_v16, %v307_v42 }
 0x283   :  { %v328_v59 = vmul.f32 %v325_v47, %v291_v49  ;;  %v1591_v47 = vmov 7.0  }
 0x284   :  { %1543 = vrcp.f32 %v1591_v47 }
 0x285   :  { %336 = vrot.lane.b32.xlu2 %v328_v59, %s1590_s2 }
 0x2a0   :  { %v320_v63 = vpop.permute.xlu0 %319 }
 0x2a1   :  { %v326_v58 = vadd.f32 %v320_v63, %v308_v56 }
 0x2a3   :  { %v329_v32 = vmul.f32 %v326_v58, %v305_v60 }
 0x2a5   :  { %338 = vrot.lane.b32.xlu0 %v329_v32, %s1590_s2 }
 0x2d7   :  { %v335_v61 = vpop.permute.xlu2 %334 }
 0x2d8   :  { %1475 = vmatmul.msk.f32.vlgmr.msra.gmra.mxu2 %vm110_vm1, %v335_v61 }
 0x2df   :  { %v337_v62 = vpop.permute.xlu2 %336 }
 0x2e0   :  { %1476 = vmatmul.msk.f32.gmra.mxu2 %vm110_vm1, %v337_v62 }
 0x317   :  { %v339_v29 = vpop.permute.xlu0 %338 }
 0x318   :  { %1477 = vmatmul.msk.f32.gmra.mxu2 %vm110_vm1, %v339_v29 }
 0x35b   :  { %v367_v48 = vpop.f32.mrf.mxu2 }
 0x35c   :  { %v368_v50 = vadd.f32 %v1522_v46, %v367_v48 }
 0x35e   :  { %v376_v31 = vadd.f32 %v368_v50, %v1766_v30  ;;  %v1544_v30 = vpop.eup %1543 }
 0x35f   :  { %v389_v49 = vmul.f32 7.0, %v1544_v30  ;;  %vm393_vm15 = vweird.f32 %v1544_v30 }
 0x360   :  { %v379_v33 = vsel %vm110_vm1, %v376_v31, 0.0 }
 0x361   :  { %380 = vadd.xlane.f32.xlu2 %v379_v33  ;;  %v390_v59 = vsub.f32 1.0, %v389_v49  ;;  %v1524_v49 = vld [vmem:[%s2112_s1 + $0xc] ss:$0 sm:$0xff] }
 0x363   :  { %v370_v35 = vpop.f32.mrf.mxu2  ;;  %v391_v51 = vmul.f32 %v1544_v30, %v390_v59 }
 0x364   :  { %v371_v36 = vadd.f32 %v1522_v46, %v370_v35 }
 0x365   :  { %v392_v52 = vadd.f32 %v1544_v30, %v391_v51 }
 0x366   :  { %v377_v39 = vadd.f32 %v371_v36, %v1780_v34 }
 0x367   :  { %v1847_v53 = vsel %vm393_vm15, %v1544_v30, %v392_v52 }
 0x368   :  { %v382_v40 = vsel %vm110_vm1, %v377_v39, 0.0 }
 0x369   :  { %383 = vadd.xlane.f32.xlu1 %v382_v40 }
 0x39b   :  { %v373_v28 = vpop.f32.mrf.mxu2 }
 0x39c   :  { %v374_v42 = vadd.f32 %v1522_v46, %v373_v28 }
 0x39e   :  { %v378_v44 = vadd.f32 %v374_v42, %v1790_v37 }
 0x3a0   :  { %v385_v16 = vsel %vm110_vm1, %v378_v44, 0.0 }
 0x3a1   :  { %386 = vadd.xlane.f32.xlu0 %v385_v16  ;;  %v1523_v16 = vld [vmem:[%s2112_s1 + $0xb] ss:$0 sm:$0xff] }
 0x3d4   :  { %v381_v34 = vpop.xlane.xlu2 %380 }
 0x3d5   :  { %v395_v54 = vmul.f32 %v1847_v53, %v381_v34 }
 0x3d7   :  { %v398_v43 = vsub.f32 %v376_v31, %v395_v54 }
 0x3d9   :  { %v401_v55 = vmul.f32 %v398_v43, %v398_v43 }
 0x3db   :  { %v404_v37 = vsel %vm110_vm1, %v401_v55, 0.0 }
 0x3dc   :  { %v384_v45 = vpop.xlane.xlu1 %383  ;;  %405 = vadd.xlane.f32.xlu2 %v404_v37 }
 0x3dd   :  { %v396_v41 = vmul.f32 %v1847_v53, %v384_v45 }
 0x3df   :  { %v399_v38 = vsub.f32 %v377_v39, %v396_v41 }
 0x3e1   :  { %v402_v56 = vmul.f32 %v399_v38, %v399_v38 }
 0x3e3   :  { %v407_v63 = vsel %vm110_vm1, %v402_v56, 0.0 }
 0x3e4   :  { %408 = vadd.xlane.f32.xlu1 %v407_v63 }
 0x414   :  { %v387_v57 = vpop.xlane.xlu0 %386 }
 0x415   :  { %v397_v58 = vmul.f32 %v1847_v53, %v387_v57 }
 0x417   :  { %v400_v60 = vsub.f32 %v378_v44, %v397_v58 }
 0x419   :  { %v403_v32 = vmul.f32 %v400_v60, %v400_v60 }
 0x41b   :  { %v410_v61 = vsel %vm110_vm1, %v403_v32, 0.0 }
 0x41c   :  { %411 = vadd.xlane.f32.xlu0 %v410_v61 }
 0x44f   :  { %v406_v62 = vpop.xlane.xlu2 %405 }
 0x450   :  { %v413_v29 = vmul.f32 %v406_v62, %v1847_v53 }
 0x452   :  { %v416_v46 = vadd.f32 1e-05, %v413_v29 }
 0x454   :  { %1545 = vrsqrt.f32 %v416_v46  ;;  %vm425_vm3 = vweird.f32 %v416_v46 }
 0x457   :  { %v409_v48 = vpop.xlane.xlu1 %408 }
 0x458   :  { %v414_v50 = vmul.f32 %v409_v48, %v1847_v53 }
 0x45a   :  { %v1546_v31 = vpop.eup %1545  ;;  %v417_v33 = vadd.f32 1e-05, %v414_v50 }
 0x45b   :  { %v420_v35 = vmul.f32 %v1546_v31, %v416_v46  ;;  %vm426_vm0 = vweird.f32 %v1546_v31 }
 0x45c   :  { %1547 = vrsqrt.f32 %v417_v33  ;;  %vm427_vm4 = vmor %vm425_vm3, %vm426_vm0  ;;  %vm435_vm6 = vweird.f32 %v417_v33 }
 0x45d   :  { %v421_v36 = vmul.f32 %v1546_v31, %v420_v35 }
 0x45f   :  { %v422_v39 = vmul.f32 0.5, %v421_v36 }
 0x461   :  { %v423_v40 = vsub.f32 1.5, %v422_v39  ;;  %v485_v39 = vunpack.c.l.b16 %v1621_v0 }
 0x462   :  { %v1548_v28 = vpop.eup %1547 }
 0x463   :  { %v424_v42 = vmul.f32 %v1546_v31, %v423_v40  ;;  %v430_v44 = vmul.f32 %v1548_v28, %v417_v33  ;;  %vm436_vm5 = vweird.f32 %v1548_v28 }
 0x464   :  { %vm437_vm7 = vmor %vm435_vm6, %vm436_vm5 }
 0x465   :  { %v428_v47 = vsel %vm427_vm4, %v1546_v31, %v424_v42  ;;  %v431_v30 = vmul.f32 %v1548_v28, %v430_v44 }
 0x466   :  { %v449_v59 = vmul.f32 %v428_v47, %v398_v43 }
 0x467   :  { %v432_v51 = vmul.f32 0.5, %v431_v30 }
 0x468   :  { %v453_v52 = vmul.f32 %v1523_v16, %v449_v59 }
 0x469   :  { %v433_v34 = vsub.f32 1.5, %v432_v51 }
 0x46a   :  { %v1863_v54 = vadd.f32 %v1524_v49, %v453_v52 }
 0x46b   :  { %v434_v55 = vmul.f32 %v1548_v28, %v433_v34 }
 0x46c   :  { %v460_v37 = vsel %vm110_vm1, %v1863_v54, 1.0 }
 0x46d   :  { %v438_v45 = vsel %vm437_vm7, %v1548_v28, %v434_v55 }
 0x46e   :  { %v450_v41 = vmul.f32 %v438_v45, %v399_v38 }
 0x470   :  { %v454_v56 = vmul.f32 %v1523_v16, %v450_v41 }
 0x472   :  { %v1867_v63 = vadd.f32 %v1524_v49, %v454_v56 }
 0x474   :  { %v461_v43 = vsel %vm110_vm1, %v1867_v63, 1.0 }
 0x48f   :  { %v412_v57 = vpop.xlane.xlu0 %411 }
 0x490   :  { %v415_v58 = vmul.f32 %v412_v57, %v1847_v53 }
 0x492   :  { %v418_v32 = vadd.f32 1e-05, %v415_v58 }
 0x494   :  { %1549 = vrsqrt.f32 %v418_v32  ;;  %vm445_vm9 = vweird.f32 %v418_v32 }
 0x49a   :  { %v1550_v61 = vpop.eup %1549 }
 0x49b   :  { %v440_v62 = vmul.f32 %v1550_v61, %v418_v32  ;;  %vm446_vm8 = vweird.f32 %v1550_v61 }
 0x49c   :  { %vm447_vm10 = vmor %vm445_vm9, %vm446_vm8 }
 0x49d   :  { %v441_v29 = vmul.f32 %v1550_v61, %v440_v62 }
 0x49f   :  { %v442_v46 = vmul.f32 0.5, %v441_v29 }
 0x4a1   :  { %v443_v48 = vsub.f32 1.5, %v442_v46 }
 0x4a3   :  { %v444_v50 = vmul.f32 %v1550_v61, %v443_v48 }
 0x4a5   :  { %v448_v38 = vsel %vm447_vm10, %v1550_v61, %v444_v50 }
 0x4a6   :  { %v451_v31 = vmul.f32 %v448_v38, %v400_v60 }
 0x4a8   :  { %v455_v33 = vmul.f32 %v1523_v16, %v451_v31 }
 0x4aa   :  { %v1872_v35 = vadd.f32 %v1524_v49, %v455_v33 }
 0x4ac   :  { %v462_v36 = vsel %vm110_vm1, %v1872_v35, 1.0 }
 0x4ad   :  { %1581 = dma.done.wait [#allocation4], 1024 }
 0x4ae   :  { %1582 = vsyncadd [#allocation4], 4294966272  ;;  %vm524_vm11 = vcmask 1043456   ;;  %v488_v40 = vunpack.c.h.b16 %v1626_v1  ;;  %v487_v28 = vunpack.c.l.b16 %v1626_v1  ;;  %v486_v42 = vunpack.c.h.b16 %v1621_v0 }
 0x4af   :  { %v501_v44 = vpack.c.b16 %v485_v39, %v485_v39  ;;  %v491_v60 = vunpack.c.l.b16 %v1636_v3  ;;  %v490_v16 = vunpack.c.h.b16 %v1631_v2  ;;  %v1883_v51 = vpack.c.bf16 %v461_v43, %v460_v37 }
 0x4b0   :  { %v504_v47 = vpack.c.b16 %v488_v40, %v488_v40  ;;  %v503_v30 = vpack.c.b16 %v487_v28, %v487_v28  ;;  %v502_v49 = vpack.c.b16 %v486_v42, %v486_v42  ;;  %vm517_vm12 = vcmask 64512  }
 0x4b1   :  { %v526_v59 = vsel %vm524_vm11, %v501_v44, 0  ;;  %v507_v52 = vpack.c.b16 %v491_v60, %v491_v60  ;;  %v506_v34 = vpack.c.b16 %v490_v16, %v490_v16  ;;  %v489_v37 = vunpack.c.l.b16 %v1631_v2 }
 0x4b2   :  { %580 = vmatpush.bf16.msra.mxu3 %v526_v59  ;;  %v535_v1 = vsel %vm524_vm11, %v504_v47, 0  ;;  %v532_v0 = vsel %vm524_vm11, %v503_v30, 0  ;;  %v529_v55 = vsel %vm524_vm11, %v502_v49, 0  ;;  %v492_v56 = vunpack.c.h.b16 %v1636_v3 }
 0x4b3   :  { %616 = vmatpush.bf16.msrb.mxu2 %v532_v0  ;;  %v544_v45 = vsel %vm524_vm11, %v507_v52, 0  ;;  %v541_v41 = vsel %vm524_vm11, %v506_v34, 0  ;;  %598 = vmatpush.bf16.msrb.mxu0 %v529_v55  ;;  %v505_v43 = vpack.c.b16 %v489_v37, %v489_v37  ;;  %v468_v2 = vpack.c.bf16 %v462_v36, %v462_v36 }
 0x4b4   :  { %634 = vmatpush.bf16.msrb.mxu1 %v535_v1  ;;  %v508_v57 = vpack.c.b16 %v492_v56, %v492_v56  ;;  %v495_v3 = vunpack.c.l.b16 %v1646_v5  ;;  %v494_v61 = vunpack.c.h.b16 %v1641_v4  ;;  %v496_v62 = vunpack.c.h.b16 %v1646_v5 }
 0x4b5   :  { %1478 = vmatmul.msk.bf16.vlgmr.msra.gmra.mxu3 %vm517_vm12, %v1883_v51  ;;  %v538_v58 = vsel %vm524_vm11, %v505_v43, 0  ;;  %v493_v5 = vunpack.c.l.b16 %v1641_v4  ;;  %v497_v4 = vunpack.c.l.b16 %v1651_v6  ;;  %v499_v39 = vunpack.c.l.b16 %v1656_v7 }
 0x4b6   :  { %1513 = vmatpush.bf16.msrb.mxu3 %v535_v1  ;;  %1482 = vmatmul.msk.bf16.vlgmr.msrb.gmra.mxu2 %vm517_vm12, %v1883_v51  ;;  %v547_v32 = vsel %vm524_vm11, %v508_v57, 0  ;;  %v511_v29 = vpack.c.b16 %v495_v3, %v495_v3  ;;  %v510_v46 = vpack.c.b16 %v494_v61, %v494_v61  ;;  %v512_v48 = vpack.c.b16 %v496_v62, %v496_v62 }
 0x4b7   :  { %688 = vmatpush.bf16.msra.mxu2 %v544_v45  ;;  %670 = vmatpush.bf16.msra.mxu0 %v541_v41  ;;  %v509_v33 = vpack.c.b16 %v493_v5, %v493_v5  ;;  %v498_v40 = vunpack.c.h.b16 %v1651_v6  ;;  %v500_v28 = vunpack.c.h.b16 %v1656_v7  ;;  %v513_v42 = vpack.c.b16 %v497_v4, %v497_v4 }
 0x4b8   :  { %1480 = vmatmul.msk.bf16.vlgmr.msrb.gmra.mxu0 %vm517_vm12, %v1883_v51  ;;  %1484 = vmatmul.msk.bf16.vlgmr.msrb.gmra.mxu1 %vm517_vm12, %v1883_v51  ;;  %v556_v50 = vsel %vm524_vm11, %v511_v29, 0  ;;  %v553_v38 = vsel %vm524_vm11, %v510_v46, 0  ;;  %v559_v31 = vsel %vm524_vm11, %v512_v48, 0  ;;  %v515_v44 = vpack.c.b16 %v499_v39, %v499_v39 }
 0x4b9   :  { %706 = vmatpush.bf16.msra.mxu1 %v547_v32  ;;  %v550_v36 = vsel %vm524_vm11, %v509_v33, 0  ;;  %v514_v60 = vpack.c.b16 %v498_v40, %v498_v40  ;;  %v516_v16 = vpack.c.b16 %v500_v28, %v500_v28  ;;  %v562_v47 = vsel %vm524_vm11, %v513_v42, 0 }
 0x4ba   :  { %652 = vmatpush.bf16.msra.mxu3 %v538_v58  ;;  %v568_v30 = vsel %vm524_vm11, %v515_v44, 0 }
 0x4bb   :  { %760 = vmatpush.bf16.msrb.mxu2 %v556_v50  ;;  %742 = vmatpush.bf16.msrb.mxu0 %v553_v38  ;;  %v565_v49 = vsel %vm524_vm11, %v514_v60, 0  ;;  %v571_v6 = vsel %vm524_vm11, %v516_v16, 0 }
 0x4bd   :  { %778 = vmatpush.bf16.msrb.mxu1 %v559_v31 }
 0x4c5   :  { %1479 = vmatmul.msk.bf16.gmra.mxu3 %vm517_vm12, %v468_v2 }
 0x4c6   :  { %1483 = vmatmul.msk.bf16.gmra.mxu2 %vm517_vm12, %v468_v2 }
 0x4c8   :  { %1481 = vmatmul.msk.bf16.gmra.mxu0 %vm517_vm12, %v468_v2  ;;  %1492 = vmatmul.msk.bf16.vlgmr.msra.gmra.mxu1 %vm517_vm12, %v1883_v51 }
 0x4c9   :  { %850 = vmatpush.bf16.msra.mxu1 %v571_v6 }
 0x4d5   :  { %1485 = vmatmul.msk.bf16.vlgmr.msrb.gmra.mxu3 %vm517_vm12, %v468_v2 }
 0x4d6   :  { %1490 = vmatmul.msk.bf16.vlgmr.msra.gmra.mxu2 %vm517_vm12, %v1883_v51  ;;  %724 = vmatpush.bf16.msrb.mxu3 %v550_v36 }
 0x4d7   :  { %832 = vmatpush.bf16.msra.mxu2 %v568_v30 }
 0x4d8   :  { %1488 = vmatmul.msk.bf16.vlgmr.msra.gmra.mxu0 %vm517_vm12, %v1883_v51  ;;  %1493 = vmatmul.msk.bf16.gmra.mxu1 %vm517_vm12, %v468_v2 }
 0x4d9   :  { %814 = vmatpush.bf16.msra.mxu0 %v565_v49 }
 0x4e5   :  { %1486 = vmatmul.msk.bf16.vlgmr.msra.gmra.mxu3 %vm517_vm12, %v1883_v51 }
 0x4e6   :  { %1491 = vmatmul.msk.bf16.gmra.mxu2 %vm517_vm12, %v468_v2  ;;  %796 = vmatpush.bf16.msra.mxu3 %v562_v47 }
 0x4e8   :  { %1489 = vmatmul.msk.bf16.gmra.mxu0 %vm517_vm12, %v468_v2  ;;  %1500 = vmatmul.msk.bf16.vlgmr.msrb.gmra.mxu1 %vm517_vm12, %v1883_v51 }
 0x4f5   :  { %1487 = vmatmul.msk.bf16.gmra.mxu3 %vm517_vm12, %v468_v2 }
 0x4f6   :  { %1498 = vmatmul.msk.bf16.vlgmr.msrb.gmra.mxu2 %vm517_vm12, %v1883_v51 }
 0x4f8   :  { %1496 = vmatmul.msk.bf16.vlgmr.msrb.gmra.mxu0 %vm517_vm12, %v1883_v51  ;;  %1501 = vmatmul.msk.bf16.gmra.mxu1 %vm517_vm12, %v468_v2 }
 0x505   :  { %1494 = vmatmul.msk.bf16.vlgmr.msrb.gmra.mxu3 %vm517_vm12, %v1883_v51 }
 0x506   :  { %1499 = vmatmul.msk.bf16.gmra.mxu2 %vm517_vm12, %v468_v2 }
 0x508   :  { %1497 = vmatmul.msk.bf16.gmra.mxu0 %vm517_vm12, %v468_v2  ;;  %1508 = vmatmul.msk.bf16.vlgmr.msra.gmra.mxu1 %vm517_vm12, %v1883_v51 }
 0x515   :  { %1495 = vmatmul.msk.bf16.gmra.mxu3 %vm517_vm12, %v468_v2 }
 0x516   :  { %1506 = vmatmul.msk.bf16.vlgmr.msra.gmra.mxu2 %vm517_vm12, %v1883_v51 }
 0x518   :  { %1504 = vmatmul.msk.bf16.vlgmr.msra.gmra.mxu0 %vm517_vm12, %v1883_v51  ;;  %1509 = vmatmul.msk.bf16.gmra.mxu1 %vm517_vm12, %v468_v2 }
 0x525   :  { %1502 = vmatmul.msk.bf16.vlgmr.msra.gmra.mxu3 %vm517_vm12, %v1883_v51 }
 0x526   :  { %1507 = vmatmul.msk.bf16.gmra.mxu2 %vm517_vm12, %v468_v2 }
 0x528   :  { %1505 = vmatmul.msk.bf16.gmra.mxu0 %vm517_vm12, %v468_v2 }
 0x535   :  { %v600_v7 = vpop.f32.mrf.mxu0  ;;  %1503 = vmatmul.msk.bf16.gmra.mxu3 %vm517_vm12, %v468_v2  ;;  %v636_v59 = vpop.f32.mrf.mxu1 }
 0x536   :  { %v862_v1 = vmax.f32 %v600_v7, 0.0  ;;  %v864_v45 = vmax.f32 %v636_v59, 0.0 }
 0x538   :  { %v582_v52 = vpop.f32.mrf.mxu3 }
 0x539   :  { %v618_v34 = vpop.f32.mrf.mxu2  ;;  %v861_v57 = vmax.f32 %v582_v52, 0.0 }
 0x53a   :  { %v863_v51 = vmax.f32 %v618_v34, 0.0 }
 0x53d   :  { %v602_v0 = vpop.f32.mrf.mxu0  ;;  %v638_v41 = vpop.f32.mrf.mxu1 }
 0x53e   :  { %v878_v55 = vmax.f32 %v602_v0, 0.0  ;;  %v880_v56 = vmax.f32 %v638_v41, 0.0 }
 0x540   :  { %v1958_v37 = vpack.c.bf16 %v878_v55, %v862_v1  ;;  %v584_v43 = vpop.f32.mrf.mxu3  ;;  %v1960_v3 = vpack.c.bf16 %v880_v56, %v864_v45 }
 0x541   :  { %v877_v58 = vmax.f32 %v584_v43, 0.0  ;;  %v620_v32 = vpop.f32.mrf.mxu2 }
 0x542   :  { %v879_v61 = vmax.f32 %v620_v32, 0.0 }
 0x543   :  { %v1962_v2 = vpack.c.bf16 %v877_v58, %v861_v57 }
 0x544   :  { %v1964_v62 = vpack.c.bf16 %v879_v61, %v863_v51 }
 0x545   :  { %v605_v29 = vpop.f32.mrf.mxu0  ;;  %v708_v48 = vpop.f32.mrf.mxu1 }
 0x546   :  { %v894_v46 = vmax.f32 %v605_v29, 0.0  ;;  %v868_v40 = vmax.f32 %v708_v48, 0.0 }
 0x548   :  { %v1966_v50 = vpack.c.bf16 %v894_v46, %v894_v46  ;;  %v587_v38 = vpop.f32.mrf.mxu3 }
 0x549   :  { %v893_v31 = vmax.f32 %v587_v38, 0.0  ;;  %v623_v5 = vpop.f32.mrf.mxu2 }
 0x54a   :  { %v895_v33 = vmax.f32 %v623_v5, 0.0 }
 0x54b   :  { %v1968_v36 = vpack.c.bf16 %v893_v31, %v893_v31 }
 0x54c   :  { %v1970_v4 = vpack.c.bf16 %v895_v33, %v895_v33 }
 0x54d   :  { %v607_v39 = vpop.f32.mrf.mxu0  ;;  %v710_v28 = vpop.f32.mrf.mxu1 }
 0x54e   :  { %v884_v42 = vmax.f32 %v710_v28, 0.0 }
 0x550   :  { %v589_v44 = vpop.f32.mrf.mxu3  ;;  %v1972_v16 = vpack.c.bf16 %v884_v42, %v868_v40 }
 0x551   :  { %v625_v60 = vpop.f32.mrf.mxu2 }
 0x555   :  { %v672_v47 = vpop.f32.mrf.mxu0  ;;  %v713_v30 = vpop.f32.mrf.mxu1 }
 0x556   :  { %v900_v49 = vmax.f32 %v713_v30, 0.0  ;;  %v866_v1 = vmax.f32 %v672_v47, 0.0 }
 0x558   :  { %v641_v6 = vpop.f32.mrf.mxu3  ;;  %v1974_v52 = vpack.c.bf16 %v900_v49, %v900_v49 }
 0x559   :  { %v896_v7 = vmax.f32 %v641_v6, 0.0  ;;  %v690_v59 = vpop.f32.mrf.mxu2 }
 0x55a   :  { %v867_v43 = vmax.f32 %v690_v59, 0.0 }
 0x55b   :  { %v1976_v34 = vpack.c.bf16 %v896_v7, %v896_v7 }
 0x55d   :  { %v674_v0 = vpop.f32.mrf.mxu0  ;;  %v715_v45 = vpop.f32.mrf.mxu1 }
 0x55e   :  { %v882_v55 = vmax.f32 %v674_v0, 0.0 }
 0x560   :  { %v1978_v41 = vpack.c.bf16 %v882_v55, %v866_v1  ;;  %v643_v56 = vpop.f32.mrf.mxu3 }
 0x561   :  { %v692_v51 = vpop.f32.mrf.mxu2 }
 0x562   :  { %v883_v57 = vmax.f32 %v692_v51, 0.0 }
 0x564   :  { %v1980_v58 = vpack.c.bf16 %v883_v57, %v867_v43 }
 0x565   :  { %v677_v32 = vpop.f32.mrf.mxu0  ;;  %v780_v29 = vpop.f32.mrf.mxu1 }
 0x566   :  { %v898_v61 = vmax.f32 %v677_v32, 0.0  ;;  %v872_v39 = vmax.f32 %v780_v29, 0.0 }
 0x568   :  { %v1982_v46 = vpack.c.bf16 %v898_v61, %v898_v61  ;;  %v654_v48 = vpop.f32.mrf.mxu3 }
 0x569   :  { %v695_v38 = vpop.f32.mrf.mxu2  ;;  %v865_v44 = vmax.f32 %v654_v48, 0.0 }
 0x56a   :  { %v899_v31 = vmax.f32 %v695_v38, 0.0 }
 0x56c   :  { %v1984_v5 = vpack.c.bf16 %v899_v31, %v899_v31 }
 0x56d   :  { %v679_v33 = vpop.f32.mrf.mxu0  ;;  %v782_v40 = vpop.f32.mrf.mxu1 }
 0x56e   :  { %v888_v28 = vmax.f32 %v782_v40, 0.0 }
 0x570   :  { %v656_v42 = vpop.f32.mrf.mxu3  ;;  %v1986_v30 = vpack.c.bf16 %v888_v28, %v872_v39 }
 0x571   :  { %v881_v60 = vmax.f32 %v656_v42, 0.0  ;;  %v697_v47 = vpop.f32.mrf.mxu2 }
 0x573   :  { %v1988_v49 = vpack.c.bf16 %v881_v60, %v865_v44 }
 0x575   :  { %v744_v6 = vpop.f32.mrf.mxu0  ;;  %v785_v7 = vpop.f32.mrf.mxu1 }
 0x576   :  { %v904_v59 = vmax.f32 %v785_v7, 0.0  ;;  %v870_v43 = vmax.f32 %v744_v6, 0.0 }
 0x578   :  { %v659_v1 = vpop.f32.mrf.mxu3  ;;  %v1990_v45 = vpack.c.bf16 %v904_v59, %v904_v59 }
 0x579   :  { %v897_v0 = vmax.f32 %v659_v1, 0.0  ;;  %v762_v55 = vpop.f32.mrf.mxu2 }
 0x57a   :  { %v871_v48 = vmax.f32 %v762_v55, 0.0 }
 0x57b   :  { %v1992_v56 = vpack.c.bf16 %v897_v0, %v897_v0 }
 0x57d   :  { %v746_v51 = vpop.f32.mrf.mxu0  ;;  %v787_v32 = vpop.f32.mrf.mxu1 }
 0x57e   :  { %v886_v57 = vmax.f32 %v746_v51, 0.0 }
 0x580   :  { %v1994_v61 = vpack.c.bf16 %v886_v57, %v870_v43  ;;  %v661_v29 = vpop.f32.mrf.mxu3 }
 0x581   :  { %v764_v38 = vpop.f32.mrf.mxu2 }
 0x582   :  { %v887_v31 = vmax.f32 %v764_v38, 0.0 }
 0x584   :  { %v1996_v33 = vpack.c.bf16 %v887_v31, %v871_v48 }
 0x585   :  { %v749_v39 = vpop.f32.mrf.mxu0  ;;  %v852_v28 = vpop.f32.mrf.mxu1 }
 0x586   :  { %v902_v40 = vmax.f32 %v749_v39, 0.0  ;;  %v876_v59 = vmax.f32 %v852_v28, 0.0 }
 0x588   :  { %v1998_v42 = vpack.c.bf16 %v902_v40, %v902_v40  ;;  %v726_v44 = vpop.f32.mrf.mxu3 }
 0x589   :  { %v767_v60 = vpop.f32.mrf.mxu2  ;;  %v869_v55 = vmax.f32 %v726_v44, 0.0 }
 0x58a   :  { %v903_v47 = vmax.f32 %v767_v60, 0.0 }
 0x58c   :  { %v2000_v6 = vpack.c.bf16 %v903_v47, %v903_v47 }
 0x58d   :  { %v751_v7 = vpop.f32.mrf.mxu0  ;;  %v854_v1 = vpop.f32.mrf.mxu1 }
 0x58e   :  { %v892_v0 = vmax.f32 %v854_v1, 0.0 }
 0x590   :  { %v728_v43 = vpop.f32.mrf.mxu3  ;;  %v2002_v32 = vpack.c.bf16 %v892_v0, %v876_v59 }
 0x591   :  { %v885_v51 = vmax.f32 %v728_v43, 0.0  ;;  %v769_v57 = vpop.f32.mrf.mxu2 }
 0x593   :  { %v2004_v29 = vpack.c.bf16 %v885_v51, %v869_v55 }
 0x595   :  { %v816_v48 = vpop.f32.mrf.mxu0  ;;  %v857_v38 = vpop.f32.mrf.mxu1 }
 0x596   :  { %v908_v31 = vmax.f32 %v857_v38, 0.0  ;;  %v874_v28 = vmax.f32 %v816_v48, 0.0 }
 0x598   :  { %v731_v39 = vpop.f32.mrf.mxu3  ;;  %v2006_v47 = vpack.c.bf16 %v908_v31, %v908_v31 }
 0x599   :  { %v901_v40 = vmax.f32 %v731_v39, 0.0  ;;  %v834_v60 = vpop.f32.mrf.mxu2 }
 0x59a   :  { %v875_v0 = vmax.f32 %v834_v60, 0.0 }
 0x59b   :  { %v2008_v7 = vpack.c.bf16 %v901_v40, %v901_v40 }
 0x59d   :  { %v818_v1 = vpop.f32.mrf.mxu0  ;;  %v859_v44 = vpop.f32.mrf.mxu1 }
 0x59e   :  { %v890_v20 = vmax.f32 %v818_v1, 0.0 }
 0x5a0   :  { %v2010_v43 = vpack.c.bf16 %v890_v20, %v874_v28  ;;  %v733_v59 = vpop.f32.mrf.mxu3 }
 0x5a1   :  { %v836_v55 = vpop.f32.mrf.mxu2 }
 0x5a2   :  { %v891_v51 = vmax.f32 %v836_v55, 0.0 }
 0x5a4   :  { %v2012_v57 = vpack.c.bf16 %v891_v51, %v875_v0 }
 0x5a5   :  { %v821_v38 = vpop.f32.mrf.mxu0 }
 0x5a6   :  { %v906_v27 = vmax.f32 %v821_v38, 0.0  ;;  %v961_v38 = vunpack.c.h.b16 %v1661_v8 }
 0x5a8   :  { %v2014_v39 = vpack.c.bf16 %v906_v27, %v906_v27  ;;  %v798_v31 = vpop.f32.mrf.mxu3  ;;  %v960_v27 = vunpack.c.l.b16 %v1661_v8 }
 0x5a9   :  { %v839_v21 = vpop.f32.mrf.mxu2  ;;  %v873_v44 = vmax.f32 %v798_v31, 0.0 }
 0x5aa   :  { %v907_v40 = vmax.f32 %v839_v21, 0.0  ;;  %v962_v21 = vunpack.c.l.b16 %v1666_v9 }
 0x5ac   :  { %v2016_v24 = vpack.c.bf16 %v907_v40, %v907_v40  ;;  %v963_v40 = vunpack.c.h.b16 %v1666_v9 }
 0x5ad   :  { %v823_v48 = vpop.f32.mrf.mxu0 }
 0x5b0   :  { %v800_v1 = vpop.f32.mrf.mxu3 }
 0x5b1   :  { %v889_v20 = vmax.f32 %v800_v1, 0.0  ;;  %v841_v28 = vpop.f32.mrf.mxu2 }
 0x5b3   :  { %v2018_v59 = vpack.c.bf16 %v889_v20, %v873_v44 }
 0x5b8   :  { %v803_v60 = vpop.f32.mrf.mxu3 }
 0x5b9   :  { %v905_v55 = vmax.f32 %v803_v60, 0.0 }
 0x5bb   :  { %v2020_v0 = vpack.c.bf16 %v905_v55, %v905_v55 }
 0x5c0   :  { %v805_v51 = vpop.f32.mrf.mxu3 }
 0x5c1   :  { %1583 = dma.done.wait [#allocation4 + $0x1], 1024 }
 0x5c2   :  { %1584 = vsyncadd [#allocation4 + $0x1], 4294966272  ;;  %v964_v31 = vunpack.c.l.b16 %v1671_v10  ;;  %v966_v48 = vunpack.c.l.b16 %v1676_v11  ;;  %v965_v1 = vunpack.c.h.b16 %v1671_v10  ;;  %v967_v44 = vunpack.c.h.b16 %v1676_v11  ;;  %s1592_s1 = smov [#allocation5]   ;;  %s1434_s22 = sshll.u32 %s2115_s4, 4  ;;  %s1435_s22 = int_to_ptr.hbm [resolvable:$true] %s1434_s22 }
 0x5c3   :  { %v976_v20 = vpack.c.b16 %v960_v27, %v960_v27  ;;  %v977_v28 = vpack.c.b16 %v961_v38, %v961_v38  ;;  %v978_v60 = vpack.c.b16 %v962_v21, %v962_v21  ;;  %v979_v55 = vpack.c.b16 %v963_v40, %v963_v40  ;;  %s1432_s19 = sshll.u32 %s1592_s1, 4  ;;  %s1433_s19 = int_to_ptr.vmem [resolvable:$true] %s1432_s19 }
 0x5c4   :  { %v980_v51 = vpack.c.b16 %v964_v31, %v964_v31  ;;  %v982_v8 = vpack.c.b16 %v966_v48, %v966_v48  ;;  %v981_v25 = vpack.c.b16 %v965_v1, %v965_v1  ;;  %v983_v22 = vpack.c.b16 %v967_v44, %v967_v44 }
 0x5c5   :  { %1015 = vmatpush.bf16.xpose.msrb.mxu3 %v976_v20  ;;  %1033 = vmatpush.bf16.xpose.msrb.mxu0 %v977_v28  ;;  %v968_v9 = vunpack.c.l.b16 %v1681_v12  ;;  %v970_v11 = vunpack.c.l.b16 %v1686_v13  ;;  %vm1397_vm8 = vcmask 7168  }
 0x5c6   :  { %1051 = vmatpush.bf16.xpose.msrb.mxu2 %v978_v60  ;;  %1069 = vmatpush.bf16.xpose.msrb.mxu1 %v979_v55 }
 0x5c7   :  { %v984_v10 = vpack.c.b16 %v968_v9, %v968_v9 }
 0x5cc   :  { %1016 = vmatmul.bf16.vlgmr.msrb.gmra.mxu3 %v1962_v2  ;;  %1034 = vmatmul.bf16.vlgmr.msrb.gmra.mxu0 %v1958_v37  ;;  %v986_v37 = vpack.c.b16 %v970_v11, %v970_v11 }
 0x5cd   :  { %1087 = vmatpush.bf16.xpose.msra.mxu3 %v980_v51  ;;  %1105 = vmatpush.bf16.xpose.msra.mxu0 %v981_v25  ;;  %v971_v25 = vunpack.c.h.b16 %v1686_v13  ;;  %v973_v13 = vunpack.c.h.b16 %v1691_v14 }
 0x5ce   :  { %1123 = vmatpush.bf16.xpose.msra.mxu2 %v982_v8  ;;  %1141 = vmatpush.bf16.xpose.msra.mxu1 %v983_v22  ;;  %v969_v22 = vunpack.c.h.b16 %v1681_v12  ;;  %v974_v12 = vunpack.c.l.b16 %v1696_v15 }
 0x5cf   :  { %1052 = vmatmul.bf16.vlgmr.msrb.gmra.mxu2 %v1964_v62  ;;  %1070 = vmatmul.bf16.vlgmr.msrb.gmra.mxu1 %v1960_v3  ;;  %v987_v2 = vpack.c.b16 %v971_v25, %v971_v25  ;;  %v972_v62 = vunpack.c.l.b16 %v1691_v14 }
 0x5d0   :  { %v985_v3 = vpack.c.b16 %v969_v22, %v969_v22 }
 0x5d5   :  { %1159 = vmatpush.bf16.xpose.msrb.mxu3 %v984_v10  ;;  %1177 = vmatpush.bf16.xpose.msrb.mxu0 %v985_v3 }
 0x5d6   :  { %1195 = vmatpush.bf16.xpose.msrb.mxu2 %v986_v37  ;;  %1213 = vmatpush.bf16.xpose.msrb.mxu1 %v987_v2 }
 0x5dc   :  { %1021 = vmatmul.bf16.gmra.mxu3 %v1968_v36  ;;  %1039 = vmatmul.bf16.gmra.mxu0 %v1966_v50  ;;  %v988_v50 = vpack.c.b16 %v972_v62, %v972_v62  ;;  %v975_v36 = vunpack.c.h.b16 %v1696_v15 }
 0x5df   :  { %1057 = vmatmul.bf16.gmra.mxu2 %v1970_v4  ;;  %1075 = vmatmul.bf16.gmra.mxu1 %v1976_v34  ;;  %v990_v4 = vpack.c.b16 %v974_v12, %v974_v12  ;;  %v991_v34 = vpack.c.b16 %v975_v36, %v975_v36 }
 0x5ec   :  { %1088 = vmatmul.bf16.vlgmr.msra.gmra.mxu3 %v1988_v49  ;;  %1106 = vmatmul.bf16.vlgmr.msra.gmra.mxu0 %v1978_v41 }
 0x5ed   :  { %1231 = vmatpush.bf16.xpose.msra.mxu3 %v988_v50 }
 0x5ef   :  { %1124 = vmatmul.bf16.vlgmr.msra.gmra.mxu2 %v1980_v58  ;;  %1142 = vmatmul.bf16.vlgmr.msra.gmra.mxu1 %v1972_v16  ;;  %v989_v16 = vpack.c.b16 %v973_v13, %v973_v13 }
 0x5f0   :  { %1267 = vmatpush.bf16.xpose.msra.mxu2 %v990_v4  ;;  %1285 = vmatpush.bf16.xpose.msra.mxu1 %v991_v34 }
 0x5f1   :  { %1249 = vmatpush.bf16.xpose.msra.mxu0 %v989_v16 }
 0x5fc   :  { %1093 = vmatmul.bf16.gmra.mxu3 %v1992_v56  ;;  %1111 = vmatmul.bf16.gmra.mxu0 %v1982_v46 }
 0x5ff   :  { %1129 = vmatmul.bf16.gmra.mxu2 %v1984_v5  ;;  %1147 = vmatmul.bf16.gmra.mxu1 %v1974_v52  ;;  %v951_v52 = vperm.slane %v1706_v17, 0 }
 0x60c   :  { %1160 = vmatmul.bf16.vlgmr.msrb.gmra.mxu3 %v2004_v29  ;;  %1178 = vmatmul.bf16.vlgmr.msrb.gmra.mxu0 %v1994_v61 }
 0x60f   :  { %1196 = vmatmul.bf16.vlgmr.msrb.gmra.mxu2 %v1996_v33  ;;  %1214 = vmatmul.bf16.vlgmr.msrb.gmra.mxu1 %v1986_v30 }
 0x61c   :  { %1165 = vmatmul.bf16.gmra.mxu3 %v2008_v7  ;;  %1183 = vmatmul.bf16.gmra.mxu0 %v1998_v42 }
 0x61f   :  { %1201 = vmatmul.bf16.gmra.mxu2 %v2000_v6  ;;  %1219 = vmatmul.bf16.gmra.mxu1 %v1990_v45 }
 0x62c   :  { %1232 = vmatmul.bf16.vlgmr.msra.gmra.mxu3 %v2018_v59  ;;  %1250 = vmatmul.bf16.vlgmr.msra.gmra.mxu0 %v2010_v43 }
 0x62f   :  { %1268 = vmatmul.bf16.vlgmr.msra.gmra.mxu2 %v2012_v57  ;;  %1286 = vmatmul.bf16.vlgmr.msra.gmra.mxu1 %v2002_v32 }
 0x63c   :  { %1237 = vmatmul.bf16.gmra.mxu3 %v2020_v0  ;;  %1255 = vmatmul.bf16.gmra.mxu0 %v2014_v39 }
 0x63f   :  { %1273 = vmatmul.bf16.gmra.mxu2 %v2016_v24  ;;  %1291 = vmatmul.bf16.gmra.mxu1 %v2006_v47 }
 0x649   :  { %v1035_v14 = vpop.f32.mrf.mxu0 }
 0x64c   :  { %v1071_v15 = vpop.f32.mrf.mxu1 }
 0x64f   :  { %v1017_v41 = vpop.f32.mrf.mxu3 }
 0x650   :  { %v1018_v58 = vadd.f32 %v1017_v41, %v951_v52 }
 0x651   :  { %v1037_v5 = vpop.f32.mrf.mxu0 }
 0x652   :  { %v1053_v46 = vpop.f32.mrf.mxu2  ;;  %v1036_v30 = vadd.f32 %v1035_v14, %v1018_v58 }
 0x654   :  { %v1073_v49 = vpop.f32.mrf.mxu1  ;;  %v1054_v45 = vadd.f32 %v1053_v46, %v1036_v30 }
 0x656   :  { %v1072_v56 = vadd.f32 %v1071_v15, %v1054_v45 }
 0x657   :  { %v1019_v61 = vpop.f32.mrf.mxu3 }
 0x658   :  { %v1020_v33 = vadd.f32 %v1019_v61, %v951_v52 }
 0x659   :  { %v1040_v6 = vpop.f32.mrf.mxu0 }
 0x65a   :  { %v1055_v42 = vpop.f32.mrf.mxu2  ;;  %v1038_v32 = vadd.f32 %v1037_v5, %v1020_v33 }
 0x65c   :  { %v1076_v24 = vpop.f32.mrf.mxu1  ;;  %v1056_v29 = vadd.f32 %v1055_v42, %v1038_v32 }
 0x65e   :  { %v1074_v47 = vadd.f32 %v1073_v49, %v1056_v29 }
 0x65f   :  { %v1022_v7 = vpop.f32.mrf.mxu3 }
 0x660   :  { %v1023_v43 = vadd.f32 %v1022_v7, %v951_v52 }
 0x661   :  { %v1042_v17 = vpop.f32.mrf.mxu0 }
 0x662   :  { %v1058_v57 = vpop.f32.mrf.mxu2  ;;  %v1041_v39 = vadd.f32 %v1040_v6, %v1023_v43 }
 0x664   :  { %v1078_v59 = vpop.f32.mrf.mxu1  ;;  %v1059_v0 = vadd.f32 %v1058_v57, %v1041_v39 }
 0x666   :  { %v1077_v27 = vadd.f32 %v1076_v24, %v1059_v0 }
 0x667   :  { %v1024_v38 = vpop.f32.mrf.mxu3 }
 0x669   :  { %v1107_v40 = vpop.f32.mrf.mxu0 }
 0x66a   :  { %v1060_v21 = vpop.f32.mrf.mxu2 }
 0x66c   :  { %v1143_v31 = vpop.f32.mrf.mxu1 }
 0x66f   :  { %v1089_v48 = vpop.f32.mrf.mxu3 }
 0x670   :  { %v1090_v34 = vadd.f32 %v1089_v48, %v1072_v56 }
 0x671   :  { %v1109_v44 = vpop.f32.mrf.mxu0 }
 0x672   :  { %v1125_v1 = vpop.f32.mrf.mxu2  ;;  %v1108_v15 = vadd.f32 %v1107_v40, %v1090_v34 }
 0x674   :  { %v1145_v20 = vpop.f32.mrf.mxu1  ;;  %v1126_v46 = vadd.f32 %v1125_v1, %v1108_v15 }
 0x676   :  { %v1144_v30 = vadd.f32 %v1143_v31, %v1126_v46 }
 0x677   :  { %v1091_v28 = vpop.f32.mrf.mxu3 }
 0x678   :  { %v1092_v60 = vadd.f32 %v1091_v28, %v1074_v47 }
 0x679   :  { %v1112_v51 = vpop.f32.mrf.mxu0 }
 0x67a   :  { %v1127_v55 = vpop.f32.mrf.mxu2  ;;  %v1110_v8 = vadd.f32 %v1109_v44, %v1092_v60 }
 0x67c   :  { %v1148_v9 = vpop.f32.mrf.mxu1  ;;  %v1128_v10 = vadd.f32 %v1127_v55, %v1110_v8 }
 0x67e   :  { %v1146_v11 = vadd.f32 %v1145_v20, %v1128_v10 }
 0x67f   :  { %v1094_v22 = vpop.f32.mrf.mxu3 }
 0x680   :  { %v1095_v42 = vadd.f32 %v1094_v22, %v1077_v27 }
 0x681   :  { %v1114_v37 = vpop.f32.mrf.mxu0 }
 0x682   :  { %v1130_v25 = vpop.f32.mrf.mxu2  ;;  %v1113_v24 = vadd.f32 %v1112_v51, %v1095_v42 }
 0x684   :  { %v1150_v3 = vpop.f32.mrf.mxu1  ;;  %v1131_v43 = vadd.f32 %v1130_v25, %v1113_v24 }
 0x686   :  { %v1149_v59 = vadd.f32 %v1148_v9, %v1131_v43 }
 0x687   :  { %v1096_v2 = vpop.f32.mrf.mxu3 }
 0x689   :  { %v1179_v50 = vpop.f32.mrf.mxu0 }
 0x68a   :  { %v1132_v62 = vpop.f32.mrf.mxu2 }
 0x68c   :  { %v1215_v12 = vpop.f32.mrf.mxu1 }
 0x68f   :  { %v1161_v13 = vpop.f32.mrf.mxu3 }
 0x690   :  { %v1162_v61 = vadd.f32 %v1161_v13, %v1144_v30 }
 0x691   :  { %v1181_v4 = vpop.f32.mrf.mxu0 }
 0x692   :  { %v1197_v36 = vpop.f32.mrf.mxu2  ;;  %v1180_v6 = vadd.f32 %v1179_v50, %v1162_v61 }
 0x694   :  { %v1217_v16 = vpop.f32.mrf.mxu1  ;;  %v1198_v7 = vadd.f32 %v1197_v36, %v1180_v6 }
 0x696   :  { %v1216_v57 = vadd.f32 %v1215_v12, %v1198_v7 }
 0x697   :  { %v1163_v14 = vpop.f32.mrf.mxu3 }
 0x698   :  { %v1164_v39 = vadd.f32 %v1163_v14, %v1146_v11 }
 0x699   :  { %v1184_v41 = vpop.f32.mrf.mxu0 }
 0x69a   :  { %v1199_v52 = vpop.f32.mrf.mxu2  ;;  %v1182_v1 = vadd.f32 %v1181_v4, %v1164_v39 }
 0x69c   :  { %v1220_v58 = vpop.f32.mrf.mxu1  ;;  %v1200_v60 = vadd.f32 %v1199_v52, %v1182_v1 }
 0x69e   :  { %v1218_v22 = vadd.f32 %v1217_v16, %v1200_v60  ;;  %v1365_v60 = vperm.slane %v1711_v18, 0 }
 0x69f   :  { %v1166_v5 = vpop.f32.mrf.mxu3 }
 0x6a0   :  { %v1167_v40 = vadd.f32 %v1166_v5, %v1149_v59 }
 0x6a1   :  { %v1186_v45 = vpop.f32.mrf.mxu0 }
 0x6a2   :  { %v1202_v49 = vpop.f32.mrf.mxu2  ;;  %v1185_v44 = vadd.f32 %v1184_v41, %v1167_v40 }
 0x6a4   :  { %v1222_v33 = vpop.f32.mrf.mxu1  ;;  %v1203_v10 = vadd.f32 %v1202_v49, %v1185_v44 }
 0x6a6   :  { %v1221_v37 = vadd.f32 %v1220_v58, %v1203_v10  ;;  %v1369_v10 = vperm.slane %v1716_v19, 0 }
 0x6a7   :  { %v1168_v32 = vpop.f32.mrf.mxu3 }
 0x6a9   :  { %v1251_v47 = vpop.f32.mrf.mxu0 }
 0x6aa   :  { %v1204_v29 = vpop.f32.mrf.mxu2 }
 0x6ac   :  { %v1287_v56 = vpop.f32.mrf.mxu1 }
 0x6af   :  { %v1233_v17 = vpop.f32.mrf.mxu3 }
 0x6b0   :  { %v1234_v0 = vadd.f32 %v1233_v17, %v1216_v57 }
 0x6b1   :  { %v1253_v21 = vpop.f32.mrf.mxu0 }
 0x6b2   :  { %v1269_v38 = vpop.f32.mrf.mxu2  ;;  %v1252_v31 = vadd.f32 %v1251_v47, %v1234_v0 }
 0x6b4   :  { %v1289_v48 = vpop.f32.mrf.mxu1  ;;  %v1270_v27 = vadd.f32 %v1269_v38, %v1252_v31 }
 0x6b6   :  { %v1288_v20 = vadd.f32 %v1287_v56, %v1270_v27 }
 0x6b7   :  { %v1235_v28 = vpop.f32.mrf.mxu3 }
 0x6b8   :  { %v1296_v51 = vadd.f32 %v1288_v20, %v1863_v54  ;;  %v1236_v25 = vadd.f32 %v1235_v28, %v1218_v22 }
 0x6b9   :  { %v1256_v8 = vpop.f32.mrf.mxu0 }
 0x6ba   :  { %v1271_v55 = vpop.f32.mrf.mxu2  ;;  %v1299_v11 = vsel %vm110_vm1, %v1296_v51, 0.0  ;;  %v1254_v12 = vadd.f32 %v1253_v21, %v1236_v25 }
 0x6bb   :  { %1300 = vadd.xlane.f32.xlu1 %v1299_v11 }
 0x6bc   :  { %v1292_v9 = vpop.f32.mrf.mxu1  ;;  %v1272_v34 = vadd.f32 %v1271_v55, %v1254_v12 }
 0x6be   :  { %v1290_v41 = vadd.f32 %v1289_v48, %v1272_v34 }
 0x6bf   :  { %v1238_v3 = vpop.f32.mrf.mxu3 }
 0x6c0   :  { %v1239_v2 = vadd.f32 %v1238_v3, %v1221_v37  ;;  %v1297_v16 = vadd.f32 %v1290_v41, %v1867_v63 }
 0x6c1   :  { %v1258_v50 = vpop.f32.mrf.mxu0 }
 0x6c2   :  { %v1274_v62 = vpop.f32.mrf.mxu2  ;;  %v1257_v13 = vadd.f32 %v1256_v8, %v1239_v2  ;;  %v1302_v58 = vsel %vm110_vm1, %v1297_v16, 0.0 }
 0x6c4   :  { %v1294_v36 = vpop.f32.mrf.mxu1  ;;  %v1275_v4 = vadd.f32 %v1274_v62, %v1257_v13 }
 0x6c6   :  { %v1293_v14 = vadd.f32 %v1292_v9, %v1275_v4 }
 0x6c7   :  { %v1240_v54 = vpop.f32.mrf.mxu3 }
 0x6c8   :  { %v1298_v52 = vadd.f32 %v1293_v14, %v1872_v35 }
 0x6ca   :  { %v1276_v15 = vpop.f32.mrf.mxu2  ;;  %v1305_v46 = vsel %vm110_vm1, %v1298_v52, 0.0 }
 0x6cb   :  { %1306 = vadd.xlane.f32.xlu0 %v1305_v46 }
 0x6d3   :  { %1303 = vadd.xlane.f32.xlu0 %v1302_v58 }
 0x72e   :  { %v1301_v33 = vpop.xlane.xlu1 %1300 }
 0x72f   :  { %v1308_v6 = vmul.f32 %v1301_v33, %v1847_v53 }
 0x731   :  { %v2081_v63 = vsub.f32 %v1296_v51, %v1308_v6 }
 0x733   :  { %v1314_v47 = vmul.f32 %v2081_v63, %v2081_v63 }
 0x735   :  { %v1317_v7 = vsel %vm110_vm1, %v1314_v47, 0.0 }
 0x73e   :  { %v1307_v5 = vpop.xlane.xlu0 %1306 }
 0x73f   :  { %v1310_v30 = vmul.f32 %v1307_v5, %v1847_v53 }
 0x741   :  { %v1313_v49 = vsub.f32 %v1298_v52, %v1310_v30 }
 0x743   :  { %v1316_v45 = vmul.f32 %v1313_v49, %v1313_v49 }
 0x745   :  { %v1323_v61 = vsel %vm110_vm1, %v1316_v45, 0.0 }
 0x746   :  { %v1304_v42 = vpop.xlane.xlu0 %1303  ;;  %1324 = vadd.xlane.f32.xlu1 %v1323_v61  ;;  %v2125_v61 = vld [vmem:[#allocation13_spill] sm:$0xff] }
 0x747   :  { %v1309_v35 = vmul.f32 %v1304_v42, %v1847_v53 }
 0x749   :  { %v1312_v32 = vsub.f32 %v1297_v16, %v1309_v35 }
 0x74b   :  { %v1315_v24 = vmul.f32 %v1312_v32, %v1312_v32 }
 0x74d   :  { %v1320_v29 = vsel %vm110_vm1, %v1315_v24, 0.0 }
 0x74e   :  { %1321 = vadd.xlane.f32.xlu2 %v1320_v29 }
 0x756   :  { %1318 = vadd.xlane.f32.xlu2 %v1317_v7 }
 0x7b9   :  { %v1325_v56 = vpop.xlane.xlu1 %1324 }
 0x7ba   :  { %v1328_v43 = vmul.f32 %v1325_v56, %v1847_v53 }
 0x7bc   :  { %v1331_v57 = vadd.f32 1e-05, %v1328_v43 }
 0x7be   :  { %1551 = vrsqrt.f32 %v1331_v57  ;;  %vm1358_vm14 = vweird.f32 %v1331_v57 }
 0x7c1   :  { %v1322_v17 = vpop.xlane.xlu2 %1321 }
 0x7c2   :  { %v1327_v39 = vmul.f32 %v1322_v17, %v1847_v53  ;;  %v2127_v17 = vld [vmem:[#allocation12_spill] sm:$0xff] }
 0x7c4   :  { %v1552_v59 = vpop.eup %1551  ;;  %v1330_v0 = vadd.f32 1e-05, %v1327_v39  ;;  %v1401_v39 = vperm.slane %v2127_v17, 0 }
 0x7c5   :  { %v1353_v38 = vmul.f32 %v1552_v59, %v1331_v57  ;;  %vm1359_vm13 = vweird.f32 %v1552_v59  ;;  %v2126_v57 = vld [vmem:[#allocation17_spill] sm:$0xff] }
 0x7c6   :  { %1553 = vrsqrt.f32 %v1330_v0  ;;  %vm1360_vm15 = vmor %vm1358_vm14, %vm1359_vm13  ;;  %vm1348_vm3 = vweird.f32 %v1330_v0 }
 0x7c7   :  { %v1354_v21 = vmul.f32 %v1552_v59, %v1353_v38 }
 0x7c9   :  { %v1355_v40 = vmul.f32 0.5, %v1354_v21  ;;  %v1319_v31 = vpop.xlane.xlu2 %1318 }
 0x7ca   :  { %v1326_v48 = vmul.f32 %v1319_v31, %v1847_v53 }
 0x7cb   :  { %v1356_v1 = vsub.f32 1.5, %v1355_v40 }
 0x7cc   :  { %v1554_v27 = vpop.eup %1553  ;;  %v1329_v44 = vadd.f32 1e-05, %v1326_v48 }
 0x7cd   :  { %v1357_v20 = vmul.f32 %v1552_v59, %v1356_v1  ;;  %v1343_v28 = vmul.f32 %v1554_v27, %v1330_v0  ;;  %vm1349_vm0 = vweird.f32 %v1554_v27 }
 0x7ce   :  { %1555 = vrsqrt.f32 %v1329_v44  ;;  %vm1350_vm4 = vmor %vm1348_vm3, %vm1349_vm0  ;;  %vm1338_vm6 = vweird.f32 %v1329_v44 }
 0x7cf   :  { %v1344_v55 = vmul.f32 %v1554_v27, %v1343_v28  ;;  %v1361_v51 = vsel %vm1360_vm15, %v1552_v59, %v1357_v20 }
 0x7d0   :  { %v1364_v8 = vmul.f32 %v1361_v51, %v1313_v49  ;;  %v2124_v49 = vld [vmem:[#allocation15_spill] sm:$0xff] }
 0x7d1   :  { %v1345_v11 = vmul.f32 0.5, %v1344_v55 }
 0x7d2   :  { %v1368_v9 = vmul.f32 %v1365_v60, %v1364_v8 }
 0x7d3   :  { %v1346_v22 = vsub.f32 1.5, %v1345_v11 }
 0x7d4   :  { %v1556_v53 = vpop.eup %1555  ;;  %v1372_v25 = vadd.f32 %v1369_v10, %v1368_v9 }
 0x7d5   :  { %v1347_v37 = vmul.f32 %v1554_v27, %v1346_v22  ;;  %v1333_v3 = vmul.f32 %v1556_v53, %v1329_v44  ;;  %vm1339_vm5 = vweird.f32 %v1556_v53 }
 0x7d6   :  { %v1387_v2 = vmul.f32 %v1372_v25, %v1751_v26  ;;  %v1375_v62 = vmul.f32 %v1372_v25, %v1736_v23  ;;  %vm1340_vm7 = vmor %vm1338_vm6, %vm1339_vm5  ;;  %v2122_v26 = vld [vmem:[#allocation14_spill] sm:$0xff]  ;;  %v2123_v23 = vld [vmem:[#allocation16_spill] sm:$0xff] }
 0x7d7   :  { %v1334_v18 = vmul.f32 %v1556_v53, %v1333_v3  ;;  %v1351_v50 = vsel %vm1350_vm4, %v1554_v27, %v1347_v37 }
 0x7d8   :  { %v1394_v12 = vsel %vm110_vm1, %v1387_v2, 0.0  ;;  %v1382_v19 = vsel %vm110_vm1, %v1375_v62, 0.0  ;;  %v1363_v13 = vmul.f32 %v1351_v50, %v1312_v32 }
 0x7d9   :  { %v1335_v36 = vmul.f32 0.5, %v1334_v18  ;;  %1395 = vadd.xlane.f32.xlu1 %v1394_v12  ;;  %1383 = vadd.xlane.f32.xlu0 %v1382_v19 }
 0x7da   :  { %v1367_v4 = vmul.f32 %v1365_v60, %v1363_v13 }
 0x7db   :  { %v1336_v34 = vsub.f32 1.5, %v1335_v36 }
 0x7dc   :  { %v1371_v14 = vadd.f32 %v1369_v10, %v1367_v4 }
 0x7dd   :  { %v1337_v54 = vmul.f32 %v1556_v53, %v1336_v34 }
 0x7de   :  { %v1374_v15 = vmul.f32 %v1371_v14, %v2122_v26  ;;  %v1386_v52 = vmul.f32 %v1371_v14, %v2123_v23 }
 0x7df   :  { %v1341_v41 = vsel %vm1340_vm7, %v1556_v53, %v1337_v54 }
 0x7e0   :  { %v1379_v46 = vsel %vm110_vm1, %v1374_v15, 0.0  ;;  %v1391_v16 = vsel %vm110_vm1, %v1386_v52, 0.0  ;;  %v1362_v58 = vmul.f32 %v1341_v41, %v2081_v63 }
 0x7e1   :  { %1380 = vadd.xlane.f32.xlu2 %v1379_v46  ;;  %1392 = vadd.xlane.f32.xlu0 %v1391_v16 }
 0x7e2   :  { %v1366_v5 = vmul.f32 %v1365_v60, %v1362_v58 }
 0x7e4   :  { %v1370_v30 = vadd.f32 %v1369_v10, %v1366_v5 }
 0x7e6   :  { %v1385_v45 = vmul.f32 %v1370_v30, %v2124_v49  ;;  %v1373_v33 = vmul.f32 %v1370_v30, %v2125_v61 }
 0x7e8   :  { %v1388_v42 = vsel %vm110_vm1, %v1385_v45, 0.0  ;;  %v1376_v35 = vsel %vm110_vm1, %v1373_v33, 0.0  ;;  %vm1425_vm1 = vcmask 9216  }
 0x7e9   :  { %1389 = vadd.xlane.f32.xlu2 %v1388_v42  ;;  %1377 = vadd.xlane.f32.xlu1 %v1376_v35 }
 0x84c   :  { %v1396_v6 = vpop.xlane.xlu1 %1395  ;;  %v1384_v32 = vpop.xlane.xlu0 %1383 }
 0x84d   :  { %v1400_v24 = vsel %vm1397_vm8, %v1384_v32, %v1396_v6 }
 0x84e   :  { %1418 = vmatpush.msrb.mxu1 %v1400_v24 }
 0x854   :  { %v1381_v63 = vpop.xlane.xlu2 %1380  ;;  %v1393_v29 = vpop.xlane.xlu0 %1392 }
 0x855   :  { %v1399_v47 = vsel %vm1397_vm8, %v1381_v63, %v1393_v29 }
 0x856   :  { %1419 = vmatpush.msrb.mxu1 %v1399_v47 }
 0x85c   :  { %v1390_v7 = vpop.xlane.xlu2 %1389  ;;  %v1378_v56 = vpop.xlane.xlu1 %1377 }
 0x85d   :  { %v1398_v43 = vsel %vm1397_vm8, %v1378_v56, %v1390_v7 }
 0x85e   :  { %1420 = vmatpush.msrb.mxu1 %v1398_v43 }
 0x85f   :  { %1510 = vmatmul.msk.f32.vlgmr.msrb.gmra.mxu1 %vm174_vm2, %v2126_v57 }
 0x8dc   :  { %v1422_v59 = vpop.f32.mrf.mxu1 }
 0x8dd   :  { %v1423_v0 = vadd.f32 %v1422_v59, %v1401_v39 }
 0x8df   :  { %1426 = vst.msk [vmem:[#allocation5] sm:$0x3] %vm1425_vm1, %v1423_v0 }
 0x8e0   :  { %1437 = dma.vmem_to_hbm [thread:$0]  %s1433_s19, 32, %s1435_s22, [#allocation6]  }
 0x8e1   :  { %1585 = dma.done.wait [#allocation6], 32  }
 0x8e2   :  { %1586 = vsyncadd [#allocation6], 4294967264 }
 0x8e3   :  { %1442 = vsyncpa [#allocation6], 1 }
 0x8e4   :  { %1443 = vsyncmov [#allocation4] }
 0x8e7   :  { %s1444_s23 = vpop.sfrf %1443 }
 0x8e8   :  { %p1511_p0 = scmp.ne.s32.totalorder %s1444_s23, 0 }
 0x8ea   :  { %1448 = shalt.err (%p1511_p0)  }
 0x8eb   :  { %1450 = vsyncmov [#allocation4 + $0x1] }
 0x8ee   :  { %s1451_s24 = vpop.sfrf %1450 }
 0x8ef   :  { %p1512_p1 = scmp.ne.s32.totalorder %s1451_s24, 0 }
 0x8f1   :  { %1455 = shalt.err (%p1512_p1)  }

</bundles_post_ra>
